<compile_context>
chip_gen: v7x
topology: tpu7x:2x2x1
jax: 0.10.0
libtpu: 0.0.40
codegen_flags: <defaults>
</compile_context>

<pallas_src>
import numpy as np
import jax
import jax.numpy as jnp
from jax import lax
from jax.experimental import pallas as pl
from jax.experimental.pallas import tpu as pltpu


TILE_N = 128          # ROIs processed per grid step
_MIN_SUB = {4: 8, 2: 16, 1: 32}


# ---------------------------------------------------------------------------
# glue: ROI -> merged (flat row index | -1) table (plain JAX, tiny)
# ---------------------------------------------------------------------------
def _round_half_away(x):
    # matches std::round used by torchvision's roi_pool kernel
    return jnp.sign(x) * jnp.floor(jnp.abs(x) + 0.5)


def _roi_pool_row_table(points, H, W, spatial_scale):
    """points: (B, P, 2) in (y, x) order (pre-flip, as in the PyTorch module).

    Returns an int32 (B*P,) table: flat row index into the (B*H*W, C) feature
    map, or -1 if the 1x1 RoIPool bin is empty (torchvision outputs exactly 0).
    """
    B, P, _ = points.shape
    y = points[..., 0]
    x = points[..., 1]
    rh = _round_half_away(y * spatial_scale).astype(jnp.int32)  # roi_start_h
    rw = _round_half_away(x * spatial_scale).astype(jnp.int32)  # roi_start_w
    hstart = jnp.clip(rh, 0, H)
    hend = jnp.clip(rh + 1, 0, H)
    wstart = jnp.clip(rw, 0, W)
    wend = jnp.clip(rw + 1, 0, W)
    valid = (hend > hstart) & (wend > wstart)
    row = jnp.clip(rh, 0, H - 1)
    col = jnp.clip(rw, 0, W - 1)
    b_idx = jnp.broadcast_to(jnp.arange(B, dtype=jnp.int32)[:, None], (B, P))
    flat = b_idx * (H * W) + row * W + col
    return jnp.where(valid, flat, -1).astype(jnp.int32).reshape(-1)


def _round_up(a, b):
    return ((a + b - 1) // b) * b


def _pick_unroll(n):
    for u in (8, 4, 2, 1):
        if n % u == 0:
            return u
    return 1


# ---------------------------------------------------------------------------
# Path 1: whole feature map single-buffered in VMEM, lane-packed output
# ---------------------------------------------------------------------------
def _gather_rows_vmem_resident(idx_tab, feat, n_pad, k):
    R, C = feat.shape
    dtype = feat.dtype
    itemsize = jnp.dtype(dtype).itemsize
    n_iters = TILE_N // k          # packed output rows per grid step
    U = _pick_unroll(n_iters)

    def kernel(idx_ref, feat_hbm, out_ref, feat_vmem, copy_sem):
        step = pl.program_id(0)

        # One-time, SINGLE-buffered residency: whole map HBM -> VMEM scratch.
        @pl.when(step == 0)
        def _():
            cp = pltpu.make_async_copy(feat_hbm, feat_vmem, copy_sem)
            cp.start()
            cp.wait()

        base = step * TILE_N
        zero_row = jnp.zeros((1, C), dtype)       # hoisted: one broadcast

        def body(jj, carry):
            for u in range(U):                    # static inner unroll
                j = jj * U + u
                pieces = []
                for t in range(k):                # k rows -> one 128-lane row
                    r = idx_ref[base + j * k + t]          # SMEM scalar
                    row = feat_vmem[pl.ds(jnp.maximum(r, 0), 1), :]
                    # exact 0 for empty bins (multiply would propagate NaN/Inf)
                    pieces.append(jnp.where(r >= 0, row, zero_row))
                packed = pieces[0] if k == 1 else jnp.concatenate(pieces, axis=-1)
                out_ref[pl.ds(j, 1), :] = packed
            return carry

        lax.fori_loop(0, n_iters // U, body, 0)

    vmem_limit = int(R * C * itemsize + 2 * TILE_N * C * itemsize + (4 << 20))
    vmem_limit = max(vmem_limit, 16 << 20)

    grid_spec = pltpu.PrefetchScalarGridSpec(
        num_scalar_prefetch=1,                     # merged idx table -> SMEM
        grid=(n_pad // TILE_N,),
        in_specs=[pl.BlockSpec(memory_space=pl.ANY)],   # map stays in HBM
        out_specs=pl.BlockSpec((n_iters, k * C), lambda n, idx: (n, 0)),
        scratch_shapes=[pltpu.VMEM((R, C), dtype),
                        pltpu.SemaphoreType.DMA(())],
    )
    out = pl.pallas_call(
        kernel,
        grid_spec=grid_spec,
        out_shape=jax.ShapeDtypeStruct((n_pad // k, k * C), dtype),
        compiler_params=pltpu.CompilerParams(
            dimension_semantics=("arbitrary",),    # step 0 must run first
            vmem_limit_bytes=vmem_limit),
    )(idx_tab, feat)
    # row-major reshape un-packs the k-per-row lane packing (metadata only)
    return out.reshape(n_pad, C)


# ---------------------------------------------------------------------------
# Path 2: feature map stays in HBM; double-buffered per-row DMA gather (P4)
# ---------------------------------------------------------------------------
def _gather_rows_hbm(idx_tab, feat, n_pad):
    R, C = feat.shape
    dtype = feat.dtype
    itemsize = jnp.dtype(dtype).itemsize
    U = _pick_unroll(TILE_N)

    def kernel(idx_ref, feat_hbm, out_ref, buf, sems):
        step = pl.program_id(0)
        nsteps = pl.num_programs(0)
        slot = step % 2

        def issue(tile_idx, slot_idx):
            tab_base = tile_idx * TILE_N
            buf_base = slot_idx * TILE_N
            def body(jj, carry):
                for u in range(U):
                    i = jj * U + u
                    # -1 (empty bin / padding) -> fetch row 0, masked later
                    r = jnp.maximum(idx_ref[tab_base + i], 0)
                    pltpu.make_async_copy(
                        feat_hbm.at[pl.ds(r, 1), :],
                        buf.at[pl.ds(buf_base + i, 1), :],
                        sems.at[slot_idx]).start()
                return carry
            lax.fori_loop(0, TILE_N // U, body, 0)

        @pl.when(step == 0)
        def _():
            issue(0, 0)                   # prime the first slot

        @pl.when(step + 1 < nsteps)
        def _():
            issue(step + 1, 1 - slot)     # prefetch next tile into other slot

        # Drain the shared per-slot semaphore: one wait per row DMA (correct
        # regardless of whether the engine signals bytes or completions);
        # completions are not attributable to rows, so wait for all of them
        # before reading any gathered row.
        buf_base = slot * TILE_N
        def wait_body(jj, carry):
            for u in range(U):
                i = jj * U + u
                pltpu.make_async_copy(
                    feat_hbm.at[pl.ds(0, 1), :],            # shape/bytes only
                    buf.at[pl.ds(buf_base + i, 1), :],
                    sems.at[slot]).wait()
            return carry
        lax.fori_loop(0, TILE_N // U, wait_body, 0)

        tab_base = step * TILE_N
        zero_row = jnp.zeros((1, C), dtype)   # hoisted

        def comp_body(jj, carry):
            for u in range(U):
                i = jj * U + u
                r = idx_ref[tab_base + i]
                row = buf[pl.ds(buf_base + i, 1), :]
                out_ref[pl.ds(i, 1), :] = jnp.where(r >= 0, row, zero_row)
            return carry
        lax.fori_loop(0, TILE_N // U, comp_body, 0)

    vmem_limit = max(int(4 * TILE_N * C * itemsize + (4 << 20)), 16 << 20)

    grid_spec = pltpu.PrefetchScalarGridSpec(
        num_scalar_prefetch=1,
        grid=(n_pad // TILE_N,),
        in_specs=[pl.BlockSpec(memory_space=pl.ANY)],
        out_specs=pl.BlockSpec((TILE_N, C), lambda n, idx: (n, 0)),
        scratch_shapes=[pltpu.VMEM((2 * TILE_N, C), dtype),
                        pltpu.SemaphoreType.DMA((2,))],
    )
    return pl.pallas_call(
        kernel,
        grid_spec=grid_spec,
        out_shape=jax.ShapeDtypeStruct((n_pad, C), dtype),
        compiler_params=pltpu.CompilerParams(
            dimension_semantics=("arbitrary",),   # manual double-buffer needs order
            vmem_limit_bytes=vmem_limit),
    )(idx_tab, feat)


# ---------------------------------------------------------------------------
# wrappers
# ---------------------------------------------------------------------------
def extract_query_features_nhwc(features_nhwc, points, *, spatial_scale=1.0,
                                extraction_method="ROIPooling",
                                vmem_resident=None):
    """Fast path: features in NHWC layout (channels on the lane axis)."""
    assert extraction_method == "ROIPooling"
    # TODO(synk): ROIAlign branch (bilinear sampling, sampling_ratio=-1) not implemented.
    B, H, W, C = features_nhwc.shape
    P = points.shape[1]
    N = B * P
    assert N > 0
    dtype = features_nhwc.dtype
    itemsize = jnp.dtype(dtype).itemsize

    idx_tab = _roi_pool_row_table(points, H, W, spatial_scale)
    n_pad = _round_up(N, TILE_N)
    if n_pad != N:
        idx_tab = jnp.concatenate(
            [idx_tab, jnp.full((n_pad - N,), -1, jnp.int32)])

    # Flatten batch+spatial into rows; channels stay on the lane axis.
    # (pure metadata reshape on contiguous NHWC — no HBM traffic)
    feat = features_nhwc.reshape(B * H * W, C)
    feat_bytes = B * H * W * C * itemsize
    gathered_bytes = n_pad * C * itemsize

    # Lane-dense output packing: k gathered rows per 128-lane output row.
    min_sub = _MIN_SUB.get(itemsize, 8)
    if C < 128 and 128 % C == 0:
        k = min(128 // C, TILE_N // min_sub)
    else:
        k = 1

    if vmem_resident is None:
        # Take the resident path only when the SINGLE-buffered map plus the
        # pipeline's output buffers fit comfortably in this chip's VMEM
        # (v5e/v6e: 128 MiB, v7x: 64 MiB per TC) AND streaming the whole map
        # is not wildly more HBM traffic than gathering the N needed rows.
        try:
            vmem_cap = int(pltpu.get_tpu_info().vmem_capacity_bytes)
        except Exception:
            vmem_cap = 64 << 20                      # conservative (v7x per-TC)
        resident_need = feat_bytes + 2 * TILE_N * C * itemsize + (4 << 20)
        fits = resident_need <= int(0.70 * vmem_cap)
        cheap_enough = feat_bytes <= max(8 << 20, 8 * gathered_bytes)
        vmem_resident = bool(fits and cheap_enough)

    if vmem_resident:
        out = _gather_rows_vmem_resident(idx_tab, feat, n_pad, k)
    else:
        out = _gather_rows_hbm(idx_tab, feat, n_pad)
    return out[:N]


def extract_query_features(features_nchw, points, *, spatial_scale=1.0,
                           extraction_method="ROIPooling", vmem_resident=None):
    """Drop-in NCHW compatibility wrapper.

    Prefer extract_query_features_nhwc: this transpose is a full HBM pass over
    the feature map and dominates the cost of the gather itself.
    """
    feats_nhwc = jnp.transpose(features_nchw, (0, 2, 3, 1))
    return extract_query_features_nhwc(
        feats_nhwc, points, spatial_scale=spatial_scale,
        extraction_method=extraction_method, vmem_resident=vmem_resident)


# ---------------------------------------------------------------------------
# numpy reference (direct RoIPool(1,1) semantics for zero-size boxes, NCHW)
# ---------------------------------------------------------------------------
def _np_reference(features_nchw, points, spatial_scale=1.0):
    feats = np.asarray(features_nchw)
    pts = np.asarray(points)
    B, C, H, W = feats.shape
    P = pts.shape[1]
    out = np.zeros((B * P, C), np.float32)
    n = 0
    for b in range(B):
        for p in range(P):
            y, x = float(pts[b, p, 0]), float(pts[b, p, 1])
            xs, ys = x * spatial_scale, y * spatial_scale
            rw = int(np.sign(xs) * np.floor(abs(xs) + 0.5))
            rh = int(np.sign(ys) * np.floor(abs(ys) + 0.5))
            hs, he = min(max(rh, 0), H), min(max(rh + 1, 0), H)
            ws, we = min(max(rw, 0), W), min(max(rw + 1, 0), W)
            if he > hs and we > ws:
                out[n] = feats[b, :, hs, ws]
            n += 1
    return out


if __name__ == "__main__":
    key = jax.random.PRNGKey(0)
    ks = jax.random.split(key, 4)

    def run_case(B, C, H, W, P, spatial_scale, kf, kp):
        feats_nhwc = jax.random.normal(kf, (B, H, W, C), dtype=jnp.float32)
        hi = int(H / spatial_scale) + 2
        # points in (y, x) order; some deliberately out of bounds to exercise
        # empty-bin masking; +0.25 offset keeps rounding away from .5 ties.
        points = (jax.random.randint(kp, (B, P, 2), -2, hi)
                  .astype(jnp.float32) + 0.25)
        feats_nchw_np = np.transpose(np.asarray(feats_nhwc), (0, 3, 1, 2))
        ref = _np_reference(feats_nchw_np, points, spatial_scale)

        # auto dispatch + both forced paths (VMEM-resident and HBM-gather)
        for resident in (None, True, False):
            out = extract_query_features_nhwc(
                feats_nhwc, points, spatial_scale=spatial_scale,
                vmem_resident=resident)
            out = jax.block_until_ready(out)
            assert out.shape == (B * P, C)
            np.testing.assert_allclose(np.asarray(out), ref, rtol=1e-6, atol=1e-6)

        # NCHW drop-in compatibility wrapper gives the same result.
        out2 = extract_query_features(jnp.asarray(feats_nchw_np), points,
                                      spatial_scale=spatial_scale)
        out2 = jax.block_until_ready(out2)
        np.testing.assert_allclose(np.asarray(out2), ref, rtol=1e-6, atol=1e-6)

    # C=32: exercises lane-packing (k=4) and padding (N=22 -> 128), one grid step.
    run_case(B=2, C=32, H=16, W=16, P=11, spatial_scale=1.0, kf=ks[0], kp=ks[1])
    # C=128 (k=1), N=160 -> two grid steps: exercises multi-tile resident path
    # and the double-buffered HBM-gather prefetch; non-unit spatial_scale.
    run_case(B=2, C=128, H=8, W=8, P=80, spatial_scale=0.5, kf=ks[2], kp=ks[3])

    print("KERNEL_OK")
</pallas_src>

<mosaic_0001>
module attributes {stable_mosaic.version = 11 : i64} {
  func.func @kernel(%arg0: i32, %arg1: memref<128xi32, #tpu.memory_space<smem>>, %arg2: memref<512x32xf32, #tpu.memory_space<any>>, %arg3: memref<32x128xf32, #tpu.memory_space<vmem>>, %arg4: memref<512x32xf32, #tpu.memory_space<vmem>>, %arg5: memref<!tpu.dma_semaphore, #tpu.memory_space<semaphore_mem>>) attributes {dimension_semantics = [#tpu.dimension_semantics<arbitrary>], iteration_bounds = array<i64: 1>, scalar_prefetch = 1 : i64, scratch_operands = 2 : i64, tpu.core_type = #tpu.core_type<tc>, window_params = [{}, {transform_indices = @transform_1, window_bounds = array<i64: 32, 128>}]} {
    %c0_i32 = arith.constant 0 : i32
    %0 = arith.cmpi eq, %arg0, %c0_i32 : i32
    %1 = arith.extui %0 : i1 to i32
    %c0_i32_0 = arith.constant 0 : i32
    %2 = arith.cmpi ne, %1, %c0_i32_0 : i32
    scf.if %2 {
      tpu.enqueue_dma source(%arg2 : memref<512x32xf32, #tpu.memory_space<any>>) target(%arg4 : memref<512x32xf32, #tpu.memory_space<vmem>>) target_semaphore(%arg5 : memref<!tpu.dma_semaphore, #tpu.memory_space<semaphore_mem>>)
      tpu.wait_dma2 semaphore(%arg5 : memref<!tpu.dma_semaphore, #tpu.memory_space<semaphore_mem>>) src(%arg2 : memref<512x32xf32, #tpu.memory_space<any>>) dst(%arg4 : memref<512x32xf32, #tpu.memory_space<vmem>>)
    } else {
    }
    %c128_i32 = arith.constant 128 : i32
    %3 = arith.muli %arg0, %c128_i32 : i32
    %cst = arith.constant 0.000000e+00 : f32
    %4 = vector.broadcast %cst : f32 to vector<1x32xf32>
    %c0_i32_1 = arith.constant 0 : i32
    %c4_i32 = arith.constant 4 : i32
    %5 = arith.addi %c0_i32_1, %c4_i32 : i32
    %c1_i32 = arith.constant 1 : i32
    scf.for %arg6 = %c0_i32_1 to %5 step %c1_i32  : i32 {
      %c8_i32 = arith.constant 8 : i32
      %6 = arith.muli %arg6, %c8_i32 : i32
      %c0_i32_3 = arith.constant 0 : i32
      %7 = arith.addi %6, %c0_i32_3 : i32
      %c4_i32_4 = arith.constant 4 : i32
      %8 = arith.muli %7, %c4_i32_4 : i32
      %9 = arith.addi %3, %8 : i32
      %c0_i32_5 = arith.constant 0 : i32
      %10 = arith.addi %9, %c0_i32_5 : i32
      %11 = arith.index_cast %10 : i32 to index
      %12 = memref.load %arg1[%11] : memref<128xi32, #tpu.memory_space<smem>>
      %c0_i32_6 = arith.constant 0 : i32
      %13 = arith.maxsi %12, %c0_i32_6 : i32
      %14 = arith.index_cast %13 : i32 to index
      %c0 = arith.constant 0 : index
      %15 = vector.load %arg4[%14, %c0] : memref<512x32xf32, #tpu.memory_space<vmem>>, vector<1x32xf32>
      %c0_i32_7 = arith.constant 0 : i32
      %16 = arith.cmpi sge, %12, %c0_i32_7 : i32
      %17 = arith.select %16, %15, %4 : vector<1x32xf32>
      %c4_i32_8 = arith.constant 4 : i32
      %18 = arith.muli %7, %c4_i32_8 : i32
      %19 = arith.addi %3, %18 : i32
      %c1_i32_9 = arith.constant 1 : i32
      %20 = arith.addi %19, %c1_i32_9 : i32
      %21 = arith.index_cast %20 : i32 to index
      %22 = memref.load %arg1[%21] : memref<128xi32, #tpu.memory_space<smem>>
      %c0_i32_10 = arith.constant 0 : i32
      %23 = arith.maxsi %22, %c0_i32_10 : i32
      %24 = arith.index_cast %23 : i32 to index
      %c0_11 = arith.constant 0 : index
      %25 = vector.load %arg4[%24, %c0_11] : memref<512x32xf32, #tpu.memory_space<vmem>>, vector<1x32xf32>
      %c0_i32_12 = arith.constant 0 : i32
      %26 = arith.cmpi sge, %22, %c0_i32_12 : i32
      %27 = arith.select %26, %25, %4 : vector<1x32xf32>
      %c4_i32_13 = arith.constant 4 : i32
      %28 = arith.muli %7, %c4_i32_13 : i32
      %29 = arith.addi %3, %28 : i32
      %c2_i32 = arith.constant 2 : i32
      %30 = arith.addi %29, %c2_i32 : i32
      %31 = arith.index_cast %30 : i32 to index
      %32 = memref.load %arg1[%31] : memref<128xi32, #tpu.memory_space<smem>>
      %c0_i32_14 = arith.constant 0 : i32
      %33 = arith.maxsi %32, %c0_i32_14 : i32
      %34 = arith.index_cast %33 : i32 to index
      %c0_15 = arith.constant 0 : index
      %35 = vector.load %arg4[%34, %c0_15] : memref<512x32xf32, #tpu.memory_space<vmem>>, vector<1x32xf32>
      %c0_i32_16 = arith.constant 0 : i32
      %36 = arith.cmpi sge, %32, %c0_i32_16 : i32
      %37 = arith.select %36, %35, %4 : vector<1x32xf32>
      %c4_i32_17 = arith.constant 4 : i32
      %38 = arith.muli %7, %c4_i32_17 : i32
      %39 = arith.addi %3, %38 : i32
      %c3_i32 = arith.constant 3 : i32
      %40 = arith.addi %39, %c3_i32 : i32
      %41 = arith.index_cast %40 : i32 to index
      %42 = memref.load %arg1[%41] : memref<128xi32, #tpu.memory_space<smem>>
      %c0_i32_18 = arith.constant 0 : i32
      %43 = arith.maxsi %42, %c0_i32_18 : i32
      %44 = arith.index_cast %43 : i32 to index
      %c0_19 = arith.constant 0 : index
      %45 = vector.load %arg4[%44, %c0_19] : memref<512x32xf32, #tpu.memory_space<vmem>>, vector<1x32xf32>
      %c0_i32_20 = arith.constant 0 : i32
      %46 = arith.cmpi sge, %42, %c0_i32_20 : i32
      %47 = arith.select %46, %45, %4 : vector<1x32xf32>
      %48 = tpu.concatenate %17, %27, %37, %47 in 1 : vector<1x32xf32>, vector<1x32xf32>, vector<1x32xf32>, vector<1x32xf32> -> vector<1x128xf32>
      %49 = arith.index_cast %7 : i32 to index
      %c0_21 = arith.constant 0 : index
      %50 = vector.load %arg3[%49, %c0_21] : memref<32x128xf32, #tpu.memory_space<vmem>>, vector<1x128xf32>
      tpu.vector_store %arg3[%49, %c0_21], %48 {strides = array<i32>} : memref<32x128xf32, #tpu.memory_space<vmem>>, vector<1x128xf32>,
      %c8_i32_22 = arith.constant 8 : i32
      %51 = arith.muli %arg6, %c8_i32_22 : i32
      %c1_i32_23 = arith.constant 1 : i32
      %52 = arith.addi %51, %c1_i32_23 : i32
      %c4_i32_24 = arith.constant 4 : i32
      %53 = arith.muli %52, %c4_i32_24 : i32
      %54 = arith.addi %3, %53 : i32
      %c0_i32_25 = arith.constant 0 : i32
      %55 = arith.addi %54, %c0_i32_25 : i32
      %56 = arith.index_cast %55 : i32 to index
      %57 = memref.load %arg1[%56] : memref<128xi32, #tpu.memory_space<smem>>
      %c0_i32_26 = arith.constant 0 : i32
      %58 = arith.maxsi %57, %c0_i32_26 : i32
      %59 = arith.index_cast %58 : i32 to index
      %c0_27 = arith.constant 0 : index
      %60 = vector.load %arg4[%59, %c0_27] : memref<512x32xf32, #tpu.memory_space<vmem>>, vector<1x32xf32>
      %c0_i32_28 = arith.constant 0 : i32
      %61 = arith.cmpi sge, %57, %c0_i32_28 : i32
      %62 = arith.select %61, %60, %4 : vector<1x32xf32>
      %c4_i32_29 = arith.constant 4 : i32
      %63 = arith.muli %52, %c4_i32_29 : i32
      %64 = arith.addi %3, %63 : i32
      %c1_i32_30 = arith.constant 1 : i32
      %65 = arith.addi %64, %c1_i32_30 : i32
      %66 = arith.index_cast %65 : i32 to index
      %67 = memref.load %arg1[%66] : memref<128xi32, #tpu.memory_space<smem>>
      %c0_i32_31 = arith.constant 0 : i32
      %68 = arith.maxsi %67, %c0_i32_31 : i32
      %69 = arith.index_cast %68 : i32 to index
      %c0_32 = arith.constant 0 : index
      %70 = vector.load %arg4[%69, %c0_32] : memref<512x32xf32, #tpu.memory_space<vmem>>, vector<1x32xf32>
      %c0_i32_33 = arith.constant 0 : i32
      %71 = arith.cmpi sge, %67, %c0_i32_33 : i32
      %72 = arith.select %71, %70, %4 : vector<1x32xf32>
      %c4_i32_34 = arith.constant 4 : i32
      %73 = arith.muli %52, %c4_i32_34 : i32
      %74 = arith.addi %3, %73 : i32
      %c2_i32_35 = arith.constant 2 : i32
      %75 = arith.addi %74, %c2_i32_35 : i32
      %76 = arith.index_cast %75 : i32 to index
      %77 = memref.load %arg1[%76] : memref<128xi32, #tpu.memory_space<smem>>
      %c0_i32_36 = arith.constant 0 : i32
      %78 = arith.maxsi %77, %c0_i32_36 : i32
      %79 = arith.index_cast %78 : i32 to index
      %c0_37 = arith.constant 0 : index
      %80 = vector.load %arg4[%79, %c0_37] : memref<512x32xf32, #tpu.memory_space<vmem>>, vector<1x32xf32>
      %c0_i32_38 = arith.constant 0 : i32
      %81 = arith.cmpi sge, %77, %c0_i32_38 : i32
      %82 = arith.select %81, %80, %4 : vector<1x32xf32>
      %c4_i32_39 = arith.constant 4 : i32
      %83 = arith.muli %52, %c4_i32_39 : i32
      %84 = arith.addi %3, %83 : i32
      %c3_i32_40 = arith.constant 3 : i32
      %85 = arith.addi %84, %c3_i32_40 : i32
      %86 = arith.index_cast %85 : i32 to index
      %87 = memref.load %arg1[%86] : memref<128xi32, #tpu.memory_space<smem>>
      %c0_i32_41 = arith.constant 0 : i32
      %88 = arith.maxsi %87, %c0_i32_41 : i32
      %89 = arith.index_cast %88 : i32 to index
      %c0_42 = arith.constant 0 : index
      %90 = vector.load %arg4[%89, %c0_42] : memref<512x32xf32, #tpu.memory_space<vmem>>, vector<1x32xf32>
      %c0_i32_43 = arith.constant 0 : i32
      %91 = arith.cmpi sge, %87, %c0_i32_43 : i32
      %92 = arith.select %91, %90, %4 : vector<1x32xf32>
      %93 = tpu.concatenate %62, %72, %82, %92 in 1 : vector<1x32xf32>, vector<1x32xf32>, vector<1x32xf32>, vector<1x32xf32> -> vector<1x128xf32>
      %94 = arith.index_cast %52 : i32 to index
      %c0_44 = arith.constant 0 : index
      %95 = vector.load %arg3[%94, %c0_44] : memref<32x128xf32, #tpu.memory_space<vmem>>, vector<1x128xf32>
      tpu.vector_store %arg3[%94, %c0_44], %93 {strides = array<i32>} : memref<32x128xf32, #tpu.memory_space<vmem>>, vector<1x128xf32>,
      %c8_i32_45 = arith.constant 8 : i32
      %96 = arith.muli %arg6, %c8_i32_45 : i32
      %c2_i32_46 = arith.constant 2 : i32
      %97 = arith.addi %96, %c2_i32_46 : i32
      %c4_i32_47 = arith.constant 4 : i32
      %98 = arith.muli %97, %c4_i32_47 : i32
      %99 = arith.addi %3, %98 : i32
      %c0_i32_48 = arith.constant 0 : i32
      %100 = arith.addi %99, %c0_i32_48 : i32
      %101 = arith.index_cast %100 : i32 to index
      %102 = memref.load %arg1[%101] : memref<128xi32, #tpu.memory_space<smem>>
      %c0_i32_49 = arith.constant 0 : i32
      %103 = arith.maxsi %102, %c0_i32_49 : i32
      %104 = arith.index_cast %103 : i32 to index
      %c0_50 = arith.constant 0 : index
      %105 = vector.load %arg4[%104, %c0_50] : memref<512x32xf32, #tpu.memory_space<vmem>>, vector<1x32xf32>
      %c0_i32_51 = arith.constant 0 : i32
      %106 = arith.cmpi sge, %102, %c0_i32_51 : i32
      %107 = arith.select %106, %105, %4 : vector<1x32xf32>
      %c4_i32_52 = arith.constant 4 : i32
      %108 = arith.muli %97, %c4_i32_52 : i32
      %109 = arith.addi %3, %108 : i32
      %c1_i32_53 = arith.constant 1 : i32
      %110 = arith.addi %109, %c1_i32_53 : i32
      %111 = arith.index_cast %110 : i32 to index
      %112 = memref.load %arg1[%111] : memref<128xi32, #tpu.memory_space<smem>>
      %c0_i32_54 = arith.constant 0 : i32
      %113 = arith.maxsi %112, %c0_i32_54 : i32
      %114 = arith.index_cast %113 : i32 to index
      %c0_55 = arith.constant 0 : index
      %115 = vector.load %arg4[%114, %c0_55] : memref<512x32xf32, #tpu.memory_space<vmem>>, vector<1x32xf32>
      %c0_i32_56 = arith.constant 0 : i32
      %116 = arith.cmpi sge, %112, %c0_i32_56 : i32
      %117 = arith.select %116, %115, %4 : vector<1x32xf32>
      %c4_i32_57 = arith.constant 4 : i32
      %118 = arith.muli %97, %c4_i32_57 : i32
      %119 = arith.addi %3, %118 : i32
      %c2_i32_58 = arith.constant 2 : i32
      %120 = arith.addi %119, %c2_i32_58 : i32
      %121 = arith.index_cast %120 : i32 to index
      %122 = memref.load %arg1[%121] : memref<128xi32, #tpu.memory_space<smem>>
      %c0_i32_59 = arith.constant 0 : i32
      %123 = arith.maxsi %122, %c0_i32_59 : i32
      %124 = arith.index_cast %123 : i32 to index
      %c0_60 = arith.constant 0 : index
      %125 = vector.load %arg4[%124, %c0_60] : memref<512x32xf32, #tpu.memory_space<vmem>>, vector<1x32xf32>
      %c0_i32_61 = arith.constant 0 : i32
      %126 = arith.cmpi sge, %122, %c0_i32_61 : i32
      %127 = arith.select %126, %125, %4 : vector<1x32xf32>
      %c4_i32_62 = arith.constant 4 : i32
      %128 = arith.muli %97, %c4_i32_62 : i32
      %129 = arith.addi %3, %128 : i32
      %c3_i32_63 = arith.constant 3 : i32
      %130 = arith.addi %129, %c3_i32_63 : i32
      %131 = arith.index_cast %130 : i32 to index
      %132 = memref.load %arg1[%131] : memref<128xi32, #tpu.memory_space<smem>>
      %c0_i32_64 = arith.constant 0 : i32
      %133 = arith.maxsi %132, %c0_i32_64 : i32
      %134 = arith.index_cast %133 : i32 to index
      %c0_65 = arith.constant 0 : index
      %135 = vector.load %arg4[%134, %c0_65] : memref<512x32xf32, #tpu.memory_space<vmem>>, vector<1x32xf32>
      %c0_i32_66 = arith.constant 0 : i32
      %136 = arith.cmpi sge, %132, %c0_i32_66 : i32
      %137 = arith.select %136, %135, %4 : vector<1x32xf32>
      %138 = tpu.concatenate %107, %117, %127, %137 in 1 : vector<1x32xf32>, vector<1x32xf32>, vector<1x32xf32>, vector<1x32xf32> -> vector<1x128xf32>
      %139 = arith.index_cast %97 : i32 to index
      %c0_67 = arith.constant 0 : index
      %140 = vector.load %arg3[%139, %c0_67] : memref<32x128xf32, #tpu.memory_space<vmem>>, vector<1x128xf32>
      tpu.vector_store %arg3[%139, %c0_67], %138 {strides = array<i32>} : memref<32x128xf32, #tpu.memory_space<vmem>>, vector<1x128xf32>,
      %c8_i32_68 = arith.constant 8 : i32
      %141 = arith.muli %arg6, %c8_i32_68 : i32
      %c3_i32_69 = arith.constant 3 : i32
      %142 = arith.addi %141, %c3_i32_69 : i32
      %c4_i32_70 = arith.constant 4 : i32
      %143 = arith.muli %142, %c4_i32_70 : i32
      %144 = arith.addi %3, %143 : i32
      %c0_i32_71 = arith.constant 0 : i32
      %145 = arith.addi %144, %c0_i32_71 : i32
      %146 = arith.index_cast %145 : i32 to index
      %147 = memref.load %arg1[%146] : memref<128xi32, #tpu.memory_space<smem>>
      %c0_i32_72 = arith.constant 0 : i32
      %148 = arith.maxsi %147, %c0_i32_72 : i32
      %149 = arith.index_cast %148 : i32 to index
      %c0_73 = arith.constant 0 : index
      %150 = vector.load %arg4[%149, %c0_73] : memref<512x32xf32, #tpu.memory_space<vmem>>, vector<1x32xf32>
      %c0_i32_74 = arith.constant 0 : i32
      %151 = arith.cmpi sge, %147, %c0_i32_74 : i32
      %152 = arith.select %151, %150, %4 : vector<1x32xf32>
      %c4_i32_75 = arith.constant 4 : i32
      %153 = arith.muli %142, %c4_i32_75 : i32
      %154 = arith.addi %3, %153 : i32
      %c1_i32_76 = arith.constant 1 : i32
      %155 = arith.addi %154, %c1_i32_76 : i32
      %156 = arith.index_cast %155 : i32 to index
      %157 = memref.load %arg1[%156] : memref<128xi32, #tpu.memory_space<smem>>
      %c0_i32_77 = arith.constant 0 : i32
      %158 = arith.maxsi %157, %c0_i32_77 : i32
      %159 = arith.index_cast %158 : i32 to index
      %c0_78 = arith.constant 0 : index
      %160 = vector.load %arg4[%159, %c0_78] : memref<512x32xf32, #tpu.memory_space<vmem>>, vector<1x32xf32>
      %c0_i32_79 = arith.constant 0 : i32
      %161 = arith.cmpi sge, %157, %c0_i32_79 : i32
      %162 = arith.select %161, %160, %4 : vector<1x32xf32>
      %c4_i32_80 = arith.constant 4 : i32
      %163 = arith.muli %142, %c4_i32_80 : i32
      %164 = arith.addi %3, %163 : i32
      %c2_i32_81 = arith.constant 2 : i32
      %165 = arith.addi %164, %c2_i32_81 : i32
      %166 = arith.index_cast %165 : i32 to index
      %167 = memref.load %arg1[%166] : memref<128xi32, #tpu.memory_space<smem>>
      %c0_i32_82 = arith.constant 0 : i32
      %168 = arith.maxsi %167, %c0_i32_82 : i32
      %169 = arith.index_cast %168 : i32 to index
      %c0_83 = arith.constant 0 : index
      %170 = vector.load %arg4[%169, %c0_83] : memref<512x32xf32, #tpu.memory_space<vmem>>, vector<1x32xf32>
      %c0_i32_84 = arith.constant 0 : i32
      %171 = arith.cmpi sge, %167, %c0_i32_84 : i32
      %172 = arith.select %171, %170, %4 : vector<1x32xf32>
      %c4_i32_85 = arith.constant 4 : i32
      %173 = arith.muli %142, %c4_i32_85 : i32
      %174 = arith.addi %3, %173 : i32
      %c3_i32_86 = arith.constant 3 : i32
      %175 = arith.addi %174, %c3_i32_86 : i32
      %176 = arith.index_cast %175 : i32 to index
      %177 = memref.load %arg1[%176] : memref<128xi32, #tpu.memory_space<smem>>
      %c0_i32_87 = arith.constant 0 : i32
      %178 = arith.maxsi %177, %c0_i32_87 : i32
      %179 = arith.index_cast %178 : i32 to index
      %c0_88 = arith.constant 0 : index
      %180 = vector.load %arg4[%179, %c0_88] : memref<512x32xf32, #tpu.memory_space<vmem>>, vector<1x32xf32>
      %c0_i32_89 = arith.constant 0 : i32
      %181 = arith.cmpi sge, %177, %c0_i32_89 : i32
      %182 = arith.select %181, %180, %4 : vector<1x32xf32>
      %183 = tpu.concatenate %152, %162, %172, %182 in 1 : vector<1x32xf32>, vector<1x32xf32>, vector<1x32xf32>, vector<1x32xf32> -> vector<1x128xf32>
      %184 = arith.index_cast %142 : i32 to index
      %c0_90 = arith.constant 0 : index
      %185 = vector.load %arg3[%184, %c0_90] : memref<32x128xf32, #tpu.memory_space<vmem>>, vector<1x128xf32>
      tpu.vector_store %arg3[%184, %c0_90], %183 {strides = array<i32>} : memref<32x128xf32, #tpu.memory_space<vmem>>, vector<1x128xf32>,
      %c8_i32_91 = arith.constant 8 : i32
      %186 = arith.muli %arg6, %c8_i32_91 : i32
      %c4_i32_92 = arith.constant 4 : i32
      %187 = arith.addi %186, %c4_i32_92 : i32
      %c4_i32_93 = arith.constant 4 : i32
      %188 = arith.muli %187, %c4_i32_93 : i32
      %189 = arith.addi %3, %188 : i32
      %c0_i32_94 = arith.constant 0 : i32
      %190 = arith.addi %189, %c0_i32_94 : i32
      %191 = arith.index_cast %190 : i32 to index
      %192 = memref.load %arg1[%191] : memref<128xi32, #tpu.memory_space<smem>>
      %c0_i32_95 = arith.constant 0 : i32
      %193 = arith.maxsi %192, %c0_i32_95 : i32
      %194 = arith.index_cast %193 : i32 to index
      %c0_96 = arith.constant 0 : index
      %195 = vector.load %arg4[%194, %c0_96] : memref<512x32xf32, #tpu.memory_space<vmem>>, vector<1x32xf32>
      %c0_i32_97 = arith.constant 0 : i32
      %196 = arith.cmpi sge, %192, %c0_i32_97 : i32
      %197 = arith.select %196, %195, %4 : vector<1x32xf32>
      %c4_i32_98 = arith.constant 4 : i32
      %198 = arith.muli %187, %c4_i32_98 : i32
      %199 = arith.addi %3, %198 : i32
      %c1_i32_99 = arith.constant 1 : i32
      %200 = arith.addi %199, %c1_i32_99 : i32
      %201 = arith.index_cast %200 : i32 to index
      %202 = memref.load %arg1[%201] : memref<128xi32, #tpu.memory_space<smem>>
      %c0_i32_100 = arith.constant 0 : i32
      %203 = arith.maxsi %202, %c0_i32_100 : i32
      %204 = arith.index_cast %203 : i32 to index
      %c0_101 = arith.constant 0 : index
      %205 = vector.load %arg4[%204, %c0_101] : memref<512x32xf32, #tpu.memory_space<vmem>>, vector<1x32xf32>
      %c0_i32_102 = arith.constant 0 : i32
      %206 = arith.cmpi sge, %202, %c0_i32_102 : i32
      %207 = arith.select %206, %205, %4 : vector<1x32xf32>
      %c4_i32_103 = arith.constant 4 : i32
      %208 = arith.muli %187, %c4_i32_103 : i32
      %209 = arith.addi %3, %208 : i32
      %c2_i32_104 = arith.constant 2 : i32
      %210 = arith.addi %209, %c2_i32_104 : i32
      %211 = arith.index_cast %210 : i32 to index
      %212 = memref.load %arg1[%211] : memref<128xi32, #tpu.memory_space<smem>>
      %c0_i32_105 = arith.constant 0 : i32
      %213 = arith.maxsi %212, %c0_i32_105 : i32
      %214 = arith.index_cast %213 : i32 to index
      %c0_106 = arith.constant 0 : index
      %215 = vector.load %arg4[%214, %c0_106] : memref<512x32xf32, #tpu.memory_space<vmem>>, vector<1x32xf32>
      %c0_i32_107 = arith.constant 0 : i32
      %216 = arith.cmpi sge, %212, %c0_i32_107 : i32
      %217 = arith.select %216, %215, %4 : vector<1x32xf32>
      %c4_i32_108 = arith.constant 4 : i32
      %218 = arith.muli %187, %c4_i32_108 : i32
      %219 = arith.addi %3, %218 : i32
      %c3_i32_109 = arith.constant 3 : i32
      %220 = arith.addi %219, %c3_i32_109 : i32
      %221 = arith.index_cast %220 : i32 to index
      %222 = memref.load %arg1[%221] : memref<128xi32, #tpu.memory_space<smem>>
      %c0_i32_110 = arith.constant 0 : i32
      %223 = arith.maxsi %222, %c0_i32_110 : i32
      %224 = arith.index_cast %223 : i32 to index
      %c0_111 = arith.constant 0 : index
      %225 = vector.load %arg4[%224, %c0_111] : memref<512x32xf32, #tpu.memory_space<vmem>>, vector<1x32xf32>
      %c0_i32_112 = arith.constant 0 : i32
      %226 = arith.cmpi sge, %222, %c0_i32_112 : i32
      %227 = arith.select %226, %225, %4 : vector<1x32xf32>
      %228 = tpu.concatenate %197, %207, %217, %227 in 1 : vector<1x32xf32>, vector<1x32xf32>, vector<1x32xf32>, vector<1x32xf32> -> vector<1x128xf32>
      %229 = arith.index_cast %187 : i32 to index
      %c0_113 = arith.constant 0 : index
      %230 = vector.load %arg3[%229, %c0_113] : memref<32x128xf32, #tpu.memory_space<vmem>>, vector<1x128xf32>
      tpu.vector_store %arg3[%229, %c0_113], %228 {strides = array<i32>} : memref<32x128xf32, #tpu.memory_space<vmem>>, vector<1x128xf32>,
      %c8_i32_114 = arith.constant 8 : i32
      %231 = arith.muli %arg6, %c8_i32_114 : i32
      %c5_i32 = arith.constant 5 : i32
      %232 = arith.addi %231, %c5_i32 : i32
      %c4_i32_115 = arith.constant 4 : i32
      %233 = arith.muli %232, %c4_i32_115 : i32
      %234 = arith.addi %3, %233 : i32
      %c0_i32_116 = arith.constant 0 : i32
      %235 = arith.addi %234, %c0_i32_116 : i32
      %236 = arith.index_cast %235 : i32 to index
      %237 = memref.load %arg1[%236] : memref<128xi32, #tpu.memory_space<smem>>
      %c0_i32_117 = arith.constant 0 : i32
      %238 = arith.maxsi %237, %c0_i32_117 : i32
      %239 = arith.index_cast %238 : i32 to index
      %c0_118 = arith.constant 0 : index
      %240 = vector.load %arg4[%239, %c0_118] : memref<512x32xf32, #tpu.memory_space<vmem>>, vector<1x32xf32>
      %c0_i32_119 = arith.constant 0 : i32
      %241 = arith.cmpi sge, %237, %c0_i32_119 : i32
      %242 = arith.select %241, %240, %4 : vector<1x32xf32>
      %c4_i32_120 = arith.constant 4 : i32
      %243 = arith.muli %232, %c4_i32_120 : i32
      %244 = arith.addi %3, %243 : i32
      %c1_i32_121 = arith.constant 1 : i32
      %245 = arith.addi %244, %c1_i32_121 : i32
      %246 = arith.index_cast %245 : i32 to index
      %247 = memref.load %arg1[%246] : memref<128xi32, #tpu.memory_space<smem>>
      %c0_i32_122 = arith.constant 0 : i32
      %248 = arith.maxsi %247, %c0_i32_122 : i32
      %249 = arith.index_cast %248 : i32 to index
      %c0_123 = arith.constant 0 : index
      %250 = vector.load %arg4[%249, %c0_123] : memref<512x32xf32, #tpu.memory_space<vmem>>, vector<1x32xf32>
      %c0_i32_124 = arith.constant 0 : i32
      %251 = arith.cmpi sge, %247, %c0_i32_124 : i32
      %252 = arith.select %251, %250, %4 : vector<1x32xf32>
      %c4_i32_125 = arith.constant 4 : i32
      %253 = arith.muli %232, %c4_i32_125 : i32
      %254 = arith.addi %3, %253 : i32
      %c2_i32_126 = arith.constant 2 : i32
      %255 = arith.addi %254, %c2_i32_126 : i32
      %256 = arith.index_cast %255 : i32 to index
      %257 = memref.load %arg1[%256] : memref<128xi32, #tpu.memory_space<smem>>
      %c0_i32_127 = arith.constant 0 : i32
      %258 = arith.maxsi %257, %c0_i32_127 : i32
      %259 = arith.index_cast %258 : i32 to index
      %c0_128 = arith.constant 0 : index
      %260 = vector.load %arg4[%259, %c0_128] : memref<512x32xf32, #tpu.memory_space<vmem>>, vector<1x32xf32>
      %c0_i32_129 = arith.constant 0 : i32
      %261 = arith.cmpi sge, %257, %c0_i32_129 : i32
      %262 = arith.select %261, %260, %4 : vector<1x32xf32>
      %c4_i32_130 = arith.constant 4 : i32
      %263 = arith.muli %232, %c4_i32_130 : i32
      %264 = arith.addi %3, %263 : i32
      %c3_i32_131 = arith.constant 3 : i32
      %265 = arith.addi %264, %c3_i32_131 : i32
      %266 = arith.index_cast %265 : i32 to index
      %267 = memref.load %arg1[%266] : memref<128xi32, #tpu.memory_space<smem>>
      %c0_i32_132 = arith.constant 0 : i32
      %268 = arith.maxsi %267, %c0_i32_132 : i32
      %269 = arith.index_cast %268 : i32 to index
      %c0_133 = arith.constant 0 : index
      %270 = vector.load %arg4[%269, %c0_133] : memref<512x32xf32, #tpu.memory_space<vmem>>, vector<1x32xf32>
      %c0_i32_134 = arith.constant 0 : i32
      %271 = arith.cmpi sge, %267, %c0_i32_134 : i32
      %272 = arith.select %271, %270, %4 : vector<1x32xf32>
      %273 = tpu.concatenate %242, %252, %262, %272 in 1 : vector<1x32xf32>, vector<1x32xf32>, vector<1x32xf32>, vector<1x32xf32> -> vector<1x128xf32>
      %274 = arith.index_cast %232 : i32 to index
      %c0_135 = arith.constant 0 : index
      %275 = vector.load %arg3[%274, %c0_135] : memref<32x128xf32, #tpu.memory_space<vmem>>, vector<1x128xf32>
      tpu.vector_store %arg3[%274, %c0_135], %273 {strides = array<i32>} : memref<32x128xf32, #tpu.memory_space<vmem>>, vector<1x128xf32>,
      %c8_i32_136 = arith.constant 8 : i32
      %276 = arith.muli %arg6, %c8_i32_136 : i32
      %c6_i32 = arith.constant 6 : i32
      %277 = arith.addi %276, %c6_i32 : i32
      %c4_i32_137 = arith.constant 4 : i32
      %278 = arith.muli %277, %c4_i32_137 : i32
      %279 = arith.addi %3, %278 : i32
      %c0_i32_138 = arith.constant 0 : i32
      %280 = arith.addi %279, %c0_i32_138 : i32
      %281 = arith.index_cast %280 : i32 to index
      %282 = memref.load %arg1[%281] : memref<128xi32, #tpu.memory_space<smem>>
      %c0_i32_139 = arith.constant 0 : i32
      %283 = arith.maxsi %282, %c0_i32_139 : i32
      %284 = arith.index_cast %283 : i32 to index
      %c0_140 = arith.constant 0 : index
      %285 = vector.load %arg4[%284, %c0_140] : memref<512x32xf32, #tpu.memory_space<vmem>>, vector<1x32xf32>
      %c0_i32_141 = arith.constant 0 : i32
      %286 = arith.cmpi sge, %282, %c0_i32_141 : i32
      %287 = arith.select %286, %285, %4 : vector<1x32xf32>
      %c4_i32_142 = arith.constant 4 : i32
      %288 = arith.muli %277, %c4_i32_142 : i32
      %289 = arith.addi %3, %288 : i32
      %c1_i32_143 = arith.constant 1 : i32
      %290 = arith.addi %289, %c1_i32_143 : i32
      %291 = arith.index_cast %290 : i32 to index
      %292 = memref.load %arg1[%291] : memref<128xi32, #tpu.memory_space<smem>>
      %c0_i32_144 = arith.constant 0 : i32
      %293 = arith.maxsi %292, %c0_i32_144 : i32
      %294 = arith.index_cast %293 : i32 to index
      %c0_145 = arith.constant 0 : index
      %295 = vector.load %arg4[%294, %c0_145] : memref<512x32xf32, #tpu.memory_space<vmem>>, vector<1x32xf32>
      %c0_i32_146 = arith.constant 0 : i32
      %296 = arith.cmpi sge, %292, %c0_i32_146 : i32
      %297 = arith.select %296, %295, %4 : vector<1x32xf32>
      %c4_i32_147 = arith.constant 4 : i32
      %298 = arith.muli %277, %c4_i32_147 : i32
      %299 = arith.addi %3, %298 : i32
      %c2_i32_148 = arith.constant 2 : i32
      %300 = arith.addi %299, %c2_i32_148 : i32
      %301 = arith.index_cast %300 : i32 to index
      %302 = memref.load %arg1[%301] : memref<128xi32, #tpu.memory_space<smem>>
      %c0_i32_149 = arith.constant 0 : i32
      %303 = arith.maxsi %302, %c0_i32_149 : i32
      %304 = arith.index_cast %303 : i32 to index
      %c0_150 = arith.constant 0 : index
      %305 = vector.load %arg4[%304, %c0_150] : memref<512x32xf32, #tpu.memory_space<vmem>>, vector<1x32xf32>
      %c0_i32_151 = arith.constant 0 : i32
      %306 = arith.cmpi sge, %302, %c0_i32_151 : i32
      %307 = arith.select %306, %305, %4 : vector<1x32xf32>
      %c4_i32_152 = arith.constant 4 : i32
      %308 = arith.muli %277, %c4_i32_152 : i32
      %309 = arith.addi %3, %308 : i32
      %c3_i32_153 = arith.constant 3 : i32
      %310 = arith.addi %309, %c3_i32_153 : i32
      %311 = arith.index_cast %310 : i32 to index
      %312 = memref.load %arg1[%311] : memref<128xi32, #tpu.memory_space<smem>>
      %c0_i32_154 = arith.constant 0 : i32
      %313 = arith.maxsi %312, %c0_i32_154 : i32
      %314 = arith.index_cast %313 : i32 to index
      %c0_155 = arith.constant 0 : index
      %315 = vector.load %arg4[%314, %c0_155] : memref<512x32xf32, #tpu.memory_space<vmem>>, vector<1x32xf32>
      %c0_i32_156 = arith.constant 0 : i32
      %316 = arith.cmpi sge, %312, %c0_i32_156 : i32
      %317 = arith.select %316, %315, %4 : vector<1x32xf32>
      %318 = tpu.concatenate %287, %297, %307, %317 in 1 : vector<1x32xf32>, vector<1x32xf32>, vector<1x32xf32>, vector<1x32xf32> -> vector<1x128xf32>
      %319 = arith.index_cast %277 : i32 to index
      %c0_157 = arith.constant 0 : index
      %320 = vector.load %arg3[%319, %c0_157] : memref<32x128xf32, #tpu.memory_space<vmem>>, vector<1x128xf32>
      tpu.vector_store %arg3[%319, %c0_157], %318 {strides = array<i32>} : memref<32x128xf32, #tpu.memory_space<vmem>>, vector<1x128xf32>,
      %c8_i32_158 = arith.constant 8 : i32
      %321 = arith.muli %arg6, %c8_i32_158 : i32
      %c7_i32 = arith.constant 7 : i32
      %322 = arith.addi %321, %c7_i32 : i32
      %c4_i32_159 = arith.constant 4 : i32
      %323 = arith.muli %322, %c4_i32_159 : i32
      %324 = arith.addi %3, %323 : i32
      %c0_i32_160 = arith.constant 0 : i32
      %325 = arith.addi %324, %c0_i32_160 : i32
      %326 = arith.index_cast %325 : i32 to index
      %327 = memref.load %arg1[%326] : memref<128xi32, #tpu.memory_space<smem>>
      %c0_i32_161 = arith.constant 0 : i32
      %328 = arith.maxsi %327, %c0_i32_161 : i32
      %329 = arith.index_cast %328 : i32 to index
      %c0_162 = arith.constant 0 : index
      %330 = vector.load %arg4[%329, %c0_162] : memref<512x32xf32, #tpu.memory_space<vmem>>, vector<1x32xf32>
      %c0_i32_163 = arith.constant 0 : i32
      %331 = arith.cmpi sge, %327, %c0_i32_163 : i32
      %332 = arith.select %331, %330, %4 : vector<1x32xf32>
      %c4_i32_164 = arith.constant 4 : i32
      %333 = arith.muli %322, %c4_i32_164 : i32
      %334 = arith.addi %3, %333 : i32
      %c1_i32_165 = arith.constant 1 : i32
      %335 = arith.addi %334, %c1_i32_165 : i32
      %336 = arith.index_cast %335 : i32 to index
      %337 = memref.load %arg1[%336] : memref<128xi32, #tpu.memory_space<smem>>
      %c0_i32_166 = arith.constant 0 : i32
      %338 = arith.maxsi %337, %c0_i32_166 : i32
      %339 = arith.index_cast %338 : i32 to index
      %c0_167 = arith.constant 0 : index
      %340 = vector.load %arg4[%339, %c0_167] : memref<512x32xf32, #tpu.memory_space<vmem>>, vector<1x32xf32>
      %c0_i32_168 = arith.constant 0 : i32
      %341 = arith.cmpi sge, %337, %c0_i32_168 : i32
      %342 = arith.select %341, %340, %4 : vector<1x32xf32>
      %c4_i32_169 = arith.constant 4 : i32
      %343 = arith.muli %322, %c4_i32_169 : i32
      %344 = arith.addi %3, %343 : i32
      %c2_i32_170 = arith.constant 2 : i32
      %345 = arith.addi %344, %c2_i32_170 : i32
      %346 = arith.index_cast %345 : i32 to index
      %347 = memref.load %arg1[%346] : memref<128xi32, #tpu.memory_space<smem>>
      %c0_i32_171 = arith.constant 0 : i32
      %348 = arith.maxsi %347, %c0_i32_171 : i32
      %349 = arith.index_cast %348 : i32 to index
      %c0_172 = arith.constant 0 : index
      %350 = vector.load %arg4[%349, %c0_172] : memref<512x32xf32, #tpu.memory_space<vmem>>, vector<1x32xf32>
      %c0_i32_173 = arith.constant 0 : i32
      %351 = arith.cmpi sge, %347, %c0_i32_173 : i32
      %352 = arith.select %351, %350, %4 : vector<1x32xf32>
      %c4_i32_174 = arith.constant 4 : i32
      %353 = arith.muli %322, %c4_i32_174 : i32
      %354 = arith.addi %3, %353 : i32
      %c3_i32_175 = arith.constant 3 : i32
      %355 = arith.addi %354, %c3_i32_175 : i32
      %356 = arith.index_cast %355 : i32 to index
      %357 = memref.load %arg1[%356] : memref<128xi32, #tpu.memory_space<smem>>
      %c0_i32_176 = arith.constant 0 : i32
      %358 = arith.maxsi %357, %c0_i32_176 : i32
      %359 = arith.index_cast %358 : i32 to index
      %c0_177 = arith.constant 0 : index
      %360 = vector.load %arg4[%359, %c0_177] : memref<512x32xf32, #tpu.memory_space<vmem>>, vector<1x32xf32>
      %c0_i32_178 = arith.constant 0 : i32
      %361 = arith.cmpi sge, %357, %c0_i32_178 : i32
      %362 = arith.select %361, %360, %4 : vector<1x32xf32>
      %363 = tpu.concatenate %332, %342, %352, %362 in 1 : vector<1x32xf32>, vector<1x32xf32>, vector<1x32xf32>, vector<1x32xf32> -> vector<1x128xf32>
      %364 = arith.index_cast %322 : i32 to index
      %c0_179 = arith.constant 0 : index
      %365 = vector.load %arg3[%364, %c0_179] : memref<32x128xf32, #tpu.memory_space<vmem>>, vector<1x128xf32>
      tpu.vector_store %arg3[%364, %c0_179], %363 {strides = array<i32>} : memref<32x128xf32, #tpu.memory_space<vmem>>, vector<1x128xf32>,
    }
    %c4_i32_2 = arith.constant 4 : i32
    return
  }
  func.func @transform_1(%arg0: i32, %arg1: memref<128xi32, #tpu.memory_space<smem>>) -> (i32, i32) {
    %c0_i32 = arith.constant 0 : i32
    %c0_i32_0 = arith.constant 0 : i32
    return %arg0, %c0_i32 : i32, i32
  }
}

</mosaic_0001>

<bundles_post_ra>
// kernel: tpu_custom_call.1
= control target key start
LH: loop header
LB: loop body
LE: loop exit
PB: predicated region body
PF: predicated region fallthrough
CT: control target
= control target key end

     0   :  { %s1422_s0 = inlined_call_operand.vmem [shape: s32[128], index: 0, kind: input, shape index: {}]   ;;  %s1423_s1 = inlined_call_operand.vmem [shape: f32[512,32], index: 1, kind: input, shape index: {}]   ;;  %s1424_s2 = inlined_call_operand.hbm [shape: f32[32,128], index: 2, kind: output, shape index: {}]  }
   0x1   :  { %s7_s11 = sshll.u32 %s1422_s0, 4  ;;  %s8_s11 = int_to_ptr.vmem [resolvable:$true] %s7_s11 }
   0x2   :  { %s853_s12 = scalar_lea.vmem %s8_s11, 16  ;;  %p858_p1 = scmp.lt.s32.totalorder %s8_s11, %s8_s11 }
   0x3   :  { %p854_p0 = scmp.ne.s32.totalorder %s8_s11, %s853_s12  ;;  %p859_p2 = scmp.lt.s32.totalorder %s853_s12, %s853_s12 }
   0x5   :  { %p860_p3 = por %p859_p2, %p858_p1 }
   0x7   :  { %p861_p4 = pnand %p860_p3, %p854_p0 }
   0x9   :  { %864 = shalt.err (!%p861_p4)  }
   0xa   :  { %s901_s13 = smov [#allocation5]  }
   0xb   :  { %10 = dma.vmem_to_smem %s8_s11, 16, %s901_s13, [#allocation4] }
   0xc   :  { %891 = dma.done.wait [#allocation4], 16 }
   0xd   :  { %892 = vsyncadd [#allocation4], 4294967280 }
   0xe   :  { %12 = sfence }
   0xf   :  { %13 = vsyncpa [#allocation7], 0  ;;  %v50_v0 = vld [vmem:[%s1423_s1] sm:$0xff]  ;;  %v52_v1 = vld [vmem:[%s1423_s1 + $0x8] sm:$0xff] }
  0x10   :  { %51 = vst [vmem:[#allocation2] sm:$0xff] %v50_v0  ;;  %53 = vst [vmem:[#allocation2 + $0x8] sm:$0xff] %v52_v1  ;;  %v54_v2 = vld [vmem:[%s1423_s1 + $0x10] sm:$0xff]  ;;  %v56_v3 = vld [vmem:[%s1423_s1 + $0x18] sm:$0xff] }
  0x11   :  { %v58_v4 = vld [vmem:[%s1423_s1 + $0x20] sm:$0xff]  ;;  %55 = vst [vmem:[#allocation2 + $0x10] sm:$0xff] %v54_v2  ;;  %57 = vst [vmem:[#allocation2 + $0x18] sm:$0xff] %v56_v3  ;;  %v60_v5 = vld [vmem:[%s1423_s1 + $0x28] sm:$0xff] }
  0x12   :  { %59 = vst [vmem:[#allocation2 + $0x20] sm:$0xff] %v58_v4  ;;  %v62_v6 = vld [vmem:[%s1423_s1 + $0x30] sm:$0xff]  ;;  %v64_v7 = vld [vmem:[%s1423_s1 + $0x38] sm:$0xff]  ;;  %61 = vst [vmem:[#allocation2 + $0x28] sm:$0xff] %v60_v5 }
  0x13   :  { %63 = vst [vmem:[#allocation2 + $0x30] sm:$0xff] %v62_v6  ;;  %65 = vst [vmem:[#allocation2 + $0x38] sm:$0xff] %v64_v7  ;;  %v66_v8 = vld [vmem:[%s1423_s1 + $0x40] sm:$0xff]  ;;  %v68_v9 = vld [vmem:[%s1423_s1 + $0x48] sm:$0xff] }
  0x14   :  { %v70_v10 = vld [vmem:[%s1423_s1 + $0x50] sm:$0xff]  ;;  %67 = vst [vmem:[#allocation2 + $0x40] sm:$0xff] %v66_v8  ;;  %69 = vst [vmem:[#allocation2 + $0x48] sm:$0xff] %v68_v9  ;;  %v72_v11 = vld [vmem:[%s1423_s1 + $0x58] sm:$0xff] }
  0x15   :  { %71 = vst [vmem:[#allocation2 + $0x50] sm:$0xff] %v70_v10  ;;  %v74_v12 = vld [vmem:[%s1423_s1 + $0x60] sm:$0xff]  ;;  %v76_v13 = vld [vmem:[%s1423_s1 + $0x68] sm:$0xff]  ;;  %73 = vst [vmem:[#allocation2 + $0x58] sm:$0xff] %v72_v11 }
  0x16   :  { %75 = vst [vmem:[#allocation2 + $0x60] sm:$0xff] %v74_v12  ;;  %77 = vst [vmem:[#allocation2 + $0x68] sm:$0xff] %v76_v13  ;;  %v78_v14 = vld [vmem:[%s1423_s1 + $0x70] sm:$0xff]  ;;  %v80_v15 = vld [vmem:[%s1423_s1 + $0x78] sm:$0xff] }
  0x17   :  { %v82_v16 = vld [vmem:[%s1423_s1 + $0x80] sm:$0xff]  ;;  %79 = vst [vmem:[#allocation2 + $0x70] sm:$0xff] %v78_v14  ;;  %81 = vst [vmem:[#allocation2 + $0x78] sm:$0xff] %v80_v15  ;;  %v84_v17 = vld [vmem:[%s1423_s1 + $0x88] sm:$0xff] }
  0x18   :  { %83 = vst [vmem:[#allocation2 + $0x80] sm:$0xff] %v82_v16  ;;  %v86_v18 = vld [vmem:[%s1423_s1 + $0x90] sm:$0xff]  ;;  %v88_v19 = vld [vmem:[%s1423_s1 + $0x98] sm:$0xff]  ;;  %85 = vst [vmem:[#allocation2 + $0x88] sm:$0xff] %v84_v17 }
  0x19   :  { %87 = vst [vmem:[#allocation2 + $0x90] sm:$0xff] %v86_v18  ;;  %89 = vst [vmem:[#allocation2 + $0x98] sm:$0xff] %v88_v19  ;;  %v90_v20 = vld [vmem:[%s1423_s1 + $0xa0] sm:$0xff]  ;;  %v92_v21 = vld [vmem:[%s1423_s1 + $0xa8] sm:$0xff] }
  0x1a   :  { %v94_v22 = vld [vmem:[%s1423_s1 + $0xb0] sm:$0xff]  ;;  %91 = vst [vmem:[#allocation2 + $0xa0] sm:$0xff] %v90_v20  ;;  %93 = vst [vmem:[#allocation2 + $0xa8] sm:$0xff] %v92_v21  ;;  %v96_v23 = vld [vmem:[%s1423_s1 + $0xb8] sm:$0xff] }
  0x1b   :  { %95 = vst [vmem:[#allocation2 + $0xb0] sm:$0xff] %v94_v22  ;;  %v98_v24 = vld [vmem:[%s1423_s1 + $0xc0] sm:$0xff]  ;;  %v100_v25 = vld [vmem:[%s1423_s1 + $0xc8] sm:$0xff]  ;;  %97 = vst [vmem:[#allocation2 + $0xb8] sm:$0xff] %v96_v23 }
  0x1c   :  { %99 = vst [vmem:[#allocation2 + $0xc0] sm:$0xff] %v98_v24  ;;  %101 = vst [vmem:[#allocation2 + $0xc8] sm:$0xff] %v100_v25  ;;  %v102_v26 = vld [vmem:[%s1423_s1 + $0xd0] sm:$0xff]  ;;  %v104_v27 = vld [vmem:[%s1423_s1 + $0xd8] sm:$0xff] }
  0x1d   :  { %v106_v28 = vld [vmem:[%s1423_s1 + $0xe0] sm:$0xff]  ;;  %103 = vst [vmem:[#allocation2 + $0xd0] sm:$0xff] %v102_v26  ;;  %105 = vst [vmem:[#allocation2 + $0xd8] sm:$0xff] %v104_v27  ;;  %v108_v29 = vld [vmem:[%s1423_s1 + $0xe8] sm:$0xff] }
  0x1e   :  { %107 = vst [vmem:[#allocation2 + $0xe0] sm:$0xff] %v106_v28  ;;  %v110_v30 = vld [vmem:[%s1423_s1 + $0xf0] sm:$0xff]  ;;  %v112_v31 = vld [vmem:[%s1423_s1 + $0xf8] sm:$0xff]  ;;  %109 = vst [vmem:[#allocation2 + $0xe8] sm:$0xff] %v108_v29 }
  0x1f   :  { %111 = vst [vmem:[#allocation2 + $0xf0] sm:$0xff] %v110_v30  ;;  %113 = vst [vmem:[#allocation2 + $0xf8] sm:$0xff] %v112_v31  ;;  %v114_v32 = vld [vmem:[%s1423_s1 + $0x100] sm:$0xff]  ;;  %v116_v33 = vld [vmem:[%s1423_s1 + $0x108] sm:$0xff] }
  0x20   :  { %v118_v34 = vld [vmem:[%s1423_s1 + $0x110] sm:$0xff]  ;;  %115 = vst [vmem:[#allocation2 + $0x100] sm:$0xff] %v114_v32  ;;  %117 = vst [vmem:[#allocation2 + $0x108] sm:$0xff] %v116_v33  ;;  %v120_v35 = vld [vmem:[%s1423_s1 + $0x118] sm:$0xff] }
  0x21   :  { %119 = vst [vmem:[#allocation2 + $0x110] sm:$0xff] %v118_v34  ;;  %v122_v36 = vld [vmem:[%s1423_s1 + $0x120] sm:$0xff]  ;;  %v124_v37 = vld [vmem:[%s1423_s1 + $0x128] sm:$0xff]  ;;  %121 = vst [vmem:[#allocation2 + $0x118] sm:$0xff] %v120_v35 }
  0x22   :  { %123 = vst [vmem:[#allocation2 + $0x120] sm:$0xff] %v122_v36  ;;  %125 = vst [vmem:[#allocation2 + $0x128] sm:$0xff] %v124_v37  ;;  %v126_v38 = vld [vmem:[%s1423_s1 + $0x130] sm:$0xff]  ;;  %v128_v39 = vld [vmem:[%s1423_s1 + $0x138] sm:$0xff] }
  0x23   :  { %v130_v40 = vld [vmem:[%s1423_s1 + $0x140] sm:$0xff]  ;;  %127 = vst [vmem:[#allocation2 + $0x130] sm:$0xff] %v126_v38  ;;  %129 = vst [vmem:[#allocation2 + $0x138] sm:$0xff] %v128_v39  ;;  %v132_v41 = vld [vmem:[%s1423_s1 + $0x148] sm:$0xff] }
  0x24   :  { %131 = vst [vmem:[#allocation2 + $0x140] sm:$0xff] %v130_v40  ;;  %v134_v42 = vld [vmem:[%s1423_s1 + $0x150] sm:$0xff]  ;;  %v136_v43 = vld [vmem:[%s1423_s1 + $0x158] sm:$0xff]  ;;  %133 = vst [vmem:[#allocation2 + $0x148] sm:$0xff] %v132_v41 }
  0x25   :  { %135 = vst [vmem:[#allocation2 + $0x150] sm:$0xff] %v134_v42  ;;  %137 = vst [vmem:[#allocation2 + $0x158] sm:$0xff] %v136_v43  ;;  %v138_v44 = vld [vmem:[%s1423_s1 + $0x160] sm:$0xff]  ;;  %v140_v45 = vld [vmem:[%s1423_s1 + $0x168] sm:$0xff] }
  0x26   :  { %v142_v46 = vld [vmem:[%s1423_s1 + $0x170] sm:$0xff]  ;;  %139 = vst [vmem:[#allocation2 + $0x160] sm:$0xff] %v138_v44  ;;  %141 = vst [vmem:[#allocation2 + $0x168] sm:$0xff] %v140_v45  ;;  %v144_v47 = vld [vmem:[%s1423_s1 + $0x178] sm:$0xff] }
  0x27   :  { %143 = vst [vmem:[#allocation2 + $0x170] sm:$0xff] %v142_v46  ;;  %v146_v48 = vld [vmem:[%s1423_s1 + $0x180] sm:$0xff]  ;;  %v148_v49 = vld [vmem:[%s1423_s1 + $0x188] sm:$0xff]  ;;  %145 = vst [vmem:[#allocation2 + $0x178] sm:$0xff] %v144_v47 }
  0x28   :  { %147 = vst [vmem:[#allocation2 + $0x180] sm:$0xff] %v146_v48  ;;  %149 = vst [vmem:[#allocation2 + $0x188] sm:$0xff] %v148_v49  ;;  %v150_v50 = vld [vmem:[%s1423_s1 + $0x190] sm:$0xff]  ;;  %v152_v51 = vld [vmem:[%s1423_s1 + $0x198] sm:$0xff] }
  0x29   :  { %v154_v52 = vld [vmem:[%s1423_s1 + $0x1a0] sm:$0xff]  ;;  %151 = vst [vmem:[#allocation2 + $0x190] sm:$0xff] %v150_v50  ;;  %153 = vst [vmem:[#allocation2 + $0x198] sm:$0xff] %v152_v51  ;;  %v156_v53 = vld [vmem:[%s1423_s1 + $0x1a8] sm:$0xff] }
  0x2a   :  { %155 = vst [vmem:[#allocation2 + $0x1a0] sm:$0xff] %v154_v52  ;;  %v158_v54 = vld [vmem:[%s1423_s1 + $0x1b0] sm:$0xff]  ;;  %v160_v55 = vld [vmem:[%s1423_s1 + $0x1b8] sm:$0xff]  ;;  %157 = vst [vmem:[#allocation2 + $0x1a8] sm:$0xff] %v156_v53 }
  0x2b   :  { %159 = vst [vmem:[#allocation2 + $0x1b0] sm:$0xff] %v158_v54  ;;  %161 = vst [vmem:[#allocation2 + $0x1b8] sm:$0xff] %v160_v55  ;;  %v162_v56 = vld [vmem:[%s1423_s1 + $0x1c0] sm:$0xff]  ;;  %v164_v57 = vld [vmem:[%s1423_s1 + $0x1c8] sm:$0xff] }
  0x2c   :  { %v166_v58 = vld [vmem:[%s1423_s1 + $0x1d0] sm:$0xff]  ;;  %163 = vst [vmem:[#allocation2 + $0x1c0] sm:$0xff] %v162_v56  ;;  %165 = vst [vmem:[#allocation2 + $0x1c8] sm:$0xff] %v164_v57  ;;  %v168_v59 = vld [vmem:[%s1423_s1 + $0x1d8] sm:$0xff] }
  0x2d   :  { %167 = vst [vmem:[#allocation2 + $0x1d0] sm:$0xff] %v166_v58  ;;  %v170_v60 = vld [vmem:[%s1423_s1 + $0x1e0] sm:$0xff]  ;;  %v172_v61 = vld [vmem:[%s1423_s1 + $0x1e8] sm:$0xff]  ;;  %169 = vst [vmem:[#allocation2 + $0x1d8] sm:$0xff] %v168_v59 }
  0x2e   :  { %171 = vst [vmem:[#allocation2 + $0x1e0] sm:$0xff] %v170_v60  ;;  %173 = vst [vmem:[#allocation2 + $0x1e8] sm:$0xff] %v172_v61  ;;  %v174_v62 = vld [vmem:[%s1423_s1 + $0x1f0] sm:$0xff]  ;;  %v176_v63 = vld [vmem:[%s1423_s1 + $0x1f8] sm:$0xff] }
  0x2f   :  { %175 = vst [vmem:[#allocation2 + $0x1f0] sm:$0xff] %v174_v62  ;;  %177 = vst [vmem:[#allocation2 + $0x1f8] sm:$0xff] %v176_v63 }
  0x30   :  { %185 = vsyncadd [#allocation3], 8192 }
  0x31   :  { %893 = dma.done.wait [#allocation3], 8192 }
  0x32   :  { %894 = vsyncadd [#allocation3], 4294959104  ;;  %s1118_s25 = smov 0  }
  0x33 LB: > { %s1124_s26 = sshll.u32 %s899_s25, 5  ;;  %s902_s15 = smov 32   ;;  %s899_s25 = sphi %s1118_s25, %s195_s25  }
  0x34   : > { %s209_s1 = sadd.s32 1, %s1124_s26  ;;  %s1128_s27 = sadd.s32 8, %s1124_s26 }
  0x35   : > { %s210_s28 = sld [smem:[#allocation5 + %s209_s1]]  ;;  %s338_s29 = sadd.s32 1, %s1128_s27 }
  0x36   : > { %s339_s30 = sld [smem:[#allocation5 + %s338_s29]]  ;;  %s220_s3 = sadd.s32 2, %s1124_s26 }
  0x37   : > { %s1132_s4 = sld [smem:[#allocation5 + %s220_s3]]  ;;  %s1135_s5 = sadd.s32 12, %s1124_s26 }
  0x38   : > { %s401_s6 = sadd.s32 1, %s1135_s5  ;;  %s1139_s7 = sadd.s32 4, %s1124_s26 }
  0x39   : > { %s1141_s8 = sld [smem:[#allocation5 + %s401_s6]]  ;;  %s275_s9 = sadd.s32 1, %s1139_s7 }
  0x3a   : > { %s1144_s10 = sld [smem:[#allocation5 + %s275_s9]]  ;;  %s1147_s11 = sadd.s32 20, %s1124_s26 }
  0x3b   : > { %p211_p5 = scmp.gt.s32.totalorder %s210_s28, 0  ;;  %p215_p6 = scmp.ge.s32.totalorder %s210_s28, 0 }
  0x3c   : > { %p340_p7 = scmp.gt.s32.totalorder %s339_s30, 0  ;;  %p344_p8 = scmp.ge.s32.totalorder %s339_s30, 0 }
  0x3d   : > { %s1434_s28 = smov (!%p211_p5, %s210_s28), 0  ;;  %p222_p9 = scmp.gt.s32.totalorder %s1132_s4, 0 }
  0x3e   : > { %s216_s12 = scalar_select %p215_p6, 1, 0 }
  0x3f   : > { %s213_s13 = scalar_lea.vmem [#allocation2], %s1434_s28  ;;  %s1436_s30 = smov (!%p340_p7, %s339_s30), 0 }
  0x40   : > { %v214_v0 = vld [vmem:[%s213_s13] sm:$0x1]  ;;  %v217_v1 = vstv %s216_s12  ;;  %s345_s14 = scalar_select %p344_p8, 1, 0 }
  0x41   : > { %vm218_vm0 = vcmp.eq.s32.totalorder %v217_v1, 1  ;;  %p226_p10 = scmp.ge.s32.totalorder %s1132_s4, 0  ;;  %s342_s16 = scalar_lea.vmem [#allocation2], %s1436_s30 }
  0x42   : > { %v219_v2 = vsel %vm218_vm0, %v214_v0, 0.0  ;;  %v343_v3 = vld [vmem:[%s342_s16] sm:$0x1]  ;;  %v346_v4 = vstv %s345_s14  ;;  %s1438_s4 = smov (!%p222_p9, %s1132_s4), 0  ;;  %p403_p11 = scmp.gt.s32.totalorder %s1141_s8, 0 }
  0x43   : > { %243 = vrot.lane.b32.xlu0 %v219_v2, %s902_s15  ;;  %vm347_vm1 = vcmp.eq.s32.totalorder %v346_v4, 1  ;;  %s227_s0 = scalar_select %p226_p10, 1, 0 }
  0x44   : > { %v348_v5 = vsel %vm347_vm1, %v343_v3, 0.0  ;;  %s224_s17 = scalar_lea.vmem [#allocation2], %s1438_s4  ;;  %p407_p12 = scmp.ge.s32.totalorder %s1141_s8, 0 }
  0x45   : > { %372 = vrot.lane.b32.xlu1 %v348_v5, %s902_s15  ;;  %v225_v6 = vld [vmem:[%s224_s17] sm:$0x1]  ;;  %v228_v7 = vstv %s227_s0  ;;  %p277_p13 = scmp.gt.s32.totalorder %s1144_s10, 0  ;;  %s1440_s8 = smov (!%p403_p11, %s1141_s8), 0 }
  0x46   : > { %vm229_vm2 = vcmp.eq.s32.totalorder %v228_v7, 1  ;;  %s408_s18 = scalar_select %p407_p12, 1, 0 }
  0x47   : > { %v230_v8 = vsel %vm229_vm2, %v225_v6, 0.0  ;;  %s903_s19 = smov 64   ;;  %p281_p0 = scmp.ge.s32.totalorder %s1144_s10, 0 }
  0x48   : > { %247 = vrot.lane.b32.xlu0 %v230_v8, %s903_s19  ;;  %s405_s20 = scalar_lea.vmem [#allocation2], %s1440_s8  ;;  %v409_v10 = vstv %s408_s18  ;;  %s1442_s10 = smov (!%p277_p13, %s1144_s10), 0 }
  0x49   : > { %v406_v9 = vld [vmem:[%s405_s20] sm:$0x1]  ;;  %vm410_vm3 = vcmp.eq.s32.totalorder %v409_v10, 1  ;;  %s282_s21 = scalar_select %p281_p0, 1, 0 }
  0x4a   : > { %v411_v11 = vsel %vm410_vm3, %v406_v9, 0.0  ;;  %s527_s22 = sadd.s32 1, %s1147_s11  ;;  %s279_s23 = scalar_lea.vmem [#allocation2], %s1442_s10 }
  0x4b   : > { %435 = vrot.lane.b32.xlu1 %v411_v11, %s902_s15  ;;  %v280_v12 = vld [vmem:[%s279_s23] sm:$0x1]  ;;  %v283_v13 = vstv %s282_s21  ;;  %s528_s24 = sld [smem:[#allocation5 + %s527_s22]]  ;;  %s1166_s1 = sadd.s32 16, %s1124_s26 }
  0x4c   : > { %vm284_vm4 = vcmp.eq.s32.totalorder %v283_v13, 1  ;;  %s464_s28 = sadd.s32 1, %s1166_s1  ;;  %s1170_s29 = sadd.s32 28, %s1124_s26 }
  0x4d   : > { %v285_v14 = vsel %vm284_vm4, %v280_v12, 0.0  ;;  %s465_s30 = sld [smem:[#allocation5 + %s464_s28]]  ;;  %s653_s3 = sadd.s32 1, %s1170_s29 }
  0x4e   : > { %309 = vrot.lane.b32.xlu0 %v285_v14, %s902_s15  ;;  %s654_s4 = sld [smem:[#allocation5 + %s653_s3]]  ;;  %s1175_s6 = sadd.s32 24, %s1124_s26 }
  0x4f   : > { %s590_s8 = sadd.s32 1, %s1175_s6  ;;  %s286_s9 = sadd.s32 2, %s1139_s7 }
  0x50   : > { %s1179_s10 = sld [smem:[#allocation5 + %s590_s8]]  ;;  %s349_s13 = sadd.s32 2, %s1128_s27 }
  0x51   : > { %s1181_s12 = sld [smem:[#allocation5 + %s286_s9]]  ;;  %p529_p1 = scmp.gt.s32.totalorder %s528_s24, 0 }
  0x52   : > { %p533_p2 = scmp.ge.s32.totalorder %s528_s24, 0  ;;  %s412_s14 = sadd.s32 2, %s1135_s5 }
  0x53   : > { %s1444_s24 = smov (!%p529_p1, %s528_s24), 0  ;;  %p466_p3 = scmp.gt.s32.totalorder %s465_s30, 0 }
  0x54   : > { %s534_s16 = scalar_select %p533_p2, 1, 0 }
  0x55   : > { %s531_s0 = scalar_lea.vmem [#allocation2], %s1444_s24  ;;  %p470_p4 = scmp.ge.s32.totalorder %s465_s30, 0 }
  0x56   : > { %v532_v15 = vld [vmem:[%s531_s0] sm:$0x1]  ;;  %v535_v16 = vstv %s534_s16  ;;  %p655_p5 = scmp.gt.s32.totalorder %s654_s4, 0  ;;  %s1446_s30 = smov (!%p466_p3, %s465_s30), 0 }
  0x57   : > { %vm536_vm5 = vcmp.eq.s32.totalorder %v535_v16, 1  ;;  %s471_s17 = scalar_select %p470_p4, 1, 0 }
  0x58   : > { %v537_v17 = vsel %vm536_vm5, %v532_v15, 0.0  ;;  %p659_p6 = scmp.ge.s32.totalorder %s654_s4, 0  ;;  %s468_s18 = scalar_lea.vmem [#allocation2], %s1446_s30 }
  0x59   : > { %561 = vrot.lane.b32.xlu1 %v537_v17, %s902_s15  ;;  %v469_v18 = vld [vmem:[%s468_s18] sm:$0x1]  ;;  %v472_v19 = vstv %s471_s17  ;;  %s1448_s4 = smov (!%p655_p5, %s654_s4), 0  ;;  %p592_p7 = scmp.gt.s32.totalorder %s1179_s10, 0 }
  0x5a   : > { %vm473_vm6 = vcmp.eq.s32.totalorder %v472_v19, 1  ;;  %s660_s20 = scalar_select %p659_p6, 1, 0 }
  0x5b   : > { %v474_v20 = vsel %vm473_vm6, %v469_v18, 0.0  ;;  %s657_s21 = scalar_lea.vmem [#allocation2], %s1448_s4  ;;  %p596_p8 = scmp.ge.s32.totalorder %s1179_s10, 0 }
  0x5c   : > { %498 = vrot.lane.b32.xlu0 %v474_v20, %s902_s15  ;;  %v658_v21 = vld [vmem:[%s657_s21] sm:$0x1]  ;;  %v661_v22 = vstv %s660_s20  ;;  %p288_p9 = scmp.gt.s32.totalorder %s1181_s12, 0  ;;  %s1450_s10 = smov (!%p592_p7, %s1179_s10), 0 }
  0x5d   : > { %vm662_vm7 = vcmp.eq.s32.totalorder %v661_v22, 1  ;;  %s597_s22 = scalar_select %p596_p8, 1, 0 }
  0x5e   : > { %v663_v23 = vsel %vm662_vm7, %v658_v21, 0.0  ;;  %p292_p10 = scmp.ge.s32.totalorder %s1181_s12, 0  ;;  %s594_s23 = scalar_lea.vmem [#allocation2], %s1450_s10 }
  0x5f   : > { %687 = vrot.lane.b32.xlu1 %v663_v23, %s902_s15  ;;  %v595_v24 = vld [vmem:[%s594_s23] sm:$0x1]  ;;  %v598_v25 = vstv %s597_s22  ;;  %s1452_s12 = smov (!%p288_p9, %s1181_s12), 0  ;;  %s350_s28 = sld [smem:[#allocation5 + %s349_s13]] }
  0x60   : > { %vm599_vm8 = vcmp.eq.s32.totalorder %v598_v25, 1  ;;  %s293_s24 = scalar_select %p292_p10, 1, 0 }
  0x61   : > { %v600_v26 = vsel %vm599_vm8, %v595_v24, 0.0  ;;  %s290_s30 = scalar_lea.vmem [#allocation2], %s1452_s12  ;;  %s413_s3 = sld [smem:[#allocation5 + %s412_s14]] }
  0x62   : > { %624 = vrot.lane.b32.xlu0 %v600_v26, %s902_s15  ;;  %v291_v27 = vld [vmem:[%s290_s30] sm:$0x1]  ;;  %v294_v28 = vstv %s293_s24  ;;  %s475_s4 = sadd.s32 2, %s1166_s1  ;;  %s538_s9 = sadd.s32 2, %s1147_s11 }
  0x63   : > { %vm295_vm9 = vcmp.eq.s32.totalorder %v294_v28, 1  ;;  %s1200_s8 = sld [smem:[#allocation5 + %s475_s4]]  ;;  %s601_s16 = sadd.s32 2, %s1175_s6 }
  0x64   : > { %v296_v29 = vsel %vm295_vm9, %v291_v27, 0.0  ;;  %s1203_s10 = sld [smem:[#allocation5 + %s538_s9]]  ;;  %s664_s15 = sadd.s32 2, %s1170_s29  ;;  %vm254_vm9 = vcmask 261120  }
  0x65   : > { %313 = vrot.lane.b32.xlu1 %v296_v29, %s903_s19  ;;  %s1207_s13 = sld [smem:[#allocation5 + %s601_s16]]  ;;  %s231_s0 = sadd.s32 3, %s1124_s26 }
  0x66   : > { %s1210_s12 = sld [smem:[#allocation5 + %s664_s15]]  ;;  %p351_p11 = scmp.gt.s32.totalorder %s350_s28, 0 }
  0x67   : > { %p355_p12 = scmp.ge.s32.totalorder %s350_s28, 0  ;;  %p414_p13 = scmp.gt.s32.totalorder %s413_s3, 0 }
  0x68   : > { %p418_p0 = scmp.ge.s32.totalorder %s413_s3, 0  ;;  %s1454_s28 = smov (!%p351_p11, %s350_s28), 0 }
  0x69   : > { %s356_s14 = scalar_select %p355_p12, 1, 0 }
  0x6a   : > { %p477_p1 = scmp.gt.s32.totalorder %s1200_s8, 0  ;;  %s353_s17 = scalar_lea.vmem [#allocation2], %s1454_s28 }
  0x6b   : > { %v354_v30 = vld [vmem:[%s353_s17] sm:$0x1]  ;;  %v357_v31 = vstv %s356_s14  ;;  %s1456_s3 = smov (!%p414_p13, %s413_s3), 0  ;;  %p481_p2 = scmp.ge.s32.totalorder %s1200_s8, 0 }
  0x6c   : > { %vm358_vm10 = vcmp.eq.s32.totalorder %v357_v31, 1  ;;  %s419_s18 = scalar_select %p418_p0, 1, 0 }
  0x6d   : > { %v359_v32 = vsel %vm358_vm10, %v354_v30, 0.0  ;;  %s416_s20 = scalar_lea.vmem [#allocation2], %s1456_s3  ;;  %s1458_s8 = smov (!%p477_p1, %s1200_s8), 0  ;;  %vm256_vm10 = vcmask 523264  }
  0x6e   : > { %376 = vrot.lane.b32.xlu0 %v359_v32, %s903_s19  ;;  %v417_v33 = vld [vmem:[%s416_s20] sm:$0x1]  ;;  %v420_v34 = vstv %s419_s18  ;;  %s482_s21 = scalar_select %p481_p2, 1, 0 }
  0x6f   : > { %vm421_vm11 = vcmp.eq.s32.totalorder %v420_v34, 1  ;;  %p540_p3 = scmp.gt.s32.totalorder %s1203_s10, 0  ;;  %s479_s22 = scalar_lea.vmem [#allocation2], %s1458_s8 }
  0x70   : > { %v422_v35 = vsel %vm421_vm11, %v417_v33, 0.0  ;;  %v480_v36 = vld [vmem:[%s479_s22] sm:$0x1]  ;;  %v483_v37 = vstv %s482_s21  ;;  %p544_p4 = scmp.ge.s32.totalorder %s1203_s10, 0  ;;  %p603_p5 = scmp.gt.s32.totalorder %s1207_s13, 0 }
  0x71   : > { %439 = vrot.lane.b32.xlu1 %v422_v35, %s903_s19  ;;  %vm484_vm12 = vcmp.eq.s32.totalorder %v483_v37, 1  ;;  %s1460_s10 = smov (!%p540_p3, %s1203_s10), 0  ;;  %p607_p6 = scmp.ge.s32.totalorder %s1207_s13, 0 }
  0x72   : > { %v485_v38 = vsel %vm484_vm12, %v480_v36, 0.0  ;;  %s545_s23 = scalar_select %p544_p4, 1, 0  ;;  %vm258_vm12 = vcmask 785408  }
  0x73   : > { %502 = vrot.lane.b32.xlu0 %v485_v38, %s903_s19  ;;  %s542_s24 = scalar_lea.vmem [#allocation2], %s1460_s10  ;;  %s1462_s13 = smov (!%p603_p5, %s1207_s13), 0 }
  0x74   : > { %v543_v39 = vld [vmem:[%s542_s24] sm:$0x1]  ;;  %v546_v40 = vstv %s545_s23  ;;  %s608_s28 = scalar_select %p607_p6, 1, 0 }
  0x75   : > { %vm547_vm13 = vcmp.eq.s32.totalorder %v546_v40, 1  ;;  %p666_p7 = scmp.gt.s32.totalorder %s1210_s12, 0  ;;  %s605_s30 = scalar_lea.vmem [#allocation2], %s1462_s13 }
  0x76   : > { %v548_v41 = vsel %vm547_vm13, %v543_v39, 0.0  ;;  %v606_v42 = vld [vmem:[%s605_s30] sm:$0x1]  ;;  %v609_v43 = vstv %s608_s28  ;;  %p670_p8 = scmp.ge.s32.totalorder %s1210_s12, 0  ;;  %s232_s3 = sld [smem:[#allocation5 + %s231_s0]] }
  0x77   : > { %565 = vrot.lane.b32.xlu1 %v548_v41, %s903_s19  ;;  %vm610_vm14 = vcmp.eq.s32.totalorder %v609_v43, 1  ;;  %s1464_s12 = smov (!%p666_p7, %s1210_s12), 0  ;;  %s297_s8 = sadd.s32 3, %s1139_s7 }
  0x78   : > { %v611_v44 = vsel %vm610_vm14, %v606_v42, 0.0  ;;  %s671_s4 = scalar_select %p670_p8, 1, 0 }
  0x79   : > { %628 = vrot.lane.b32.xlu0 %v611_v44, %s903_s19  ;;  %s668_s9 = scalar_lea.vmem [#allocation2], %s1464_s12  ;;  %s298_s10 = sld [smem:[#allocation5 + %s297_s8]] }
  0x7a   : > { %v669_v45 = vld [vmem:[%s668_s9] sm:$0x1]  ;;  %v672_v46 = vstv %s671_s4  ;;  %s360_s16 = sadd.s32 3, %s1128_s27  ;;  %s423_s15 = sadd.s32 3, %s1135_s5 }
  0x7b   : > { %vm673_vm15 = vcmp.eq.s32.totalorder %v672_v46, 1  ;;  %s361_s13 = sld [smem:[#allocation5 + %s360_s16]]  ;;  %s486_s14 = sadd.s32 3, %s1166_s1 }
  0x7c   : > { %v674_v47 = vsel %vm673_vm15, %v669_v45, 0.0  ;;  %p233_p9 = scmp.gt.s32.totalorder %s232_s3, 0  ;;  %p237_p10 = scmp.ge.s32.totalorder %s232_s3, 0 }
  0x7d   : > { %691 = vrot.lane.b32.xlu1 %v674_v47, %s903_s19  ;;  %s1236_s0 = sld [smem:[#allocation5 + %s423_s15]]  ;;  %s904_s20 = smov 96  }
  0x7e   : > { %s1466_s3 = smov (!%p233_p9, %s232_s3), 0  ;;  %s487_s23 = sld [smem:[#allocation5 + %s486_s14]] }
  0x7f   : > { %s238_s17 = scalar_select %p237_p10, 1, 0 }
  0x80   : > { %p299_p11 = scmp.gt.s32.totalorder %s298_s10, 0  ;;  %s235_s18 = scalar_lea.vmem [#allocation2], %s1466_s3 }
  0x81   : > { %v236_v48 = vld [vmem:[%s235_s18] sm:$0x1]  ;;  %v239_v49 = vstv %s238_s17  ;;  %p303_p12 = scmp.ge.s32.totalorder %s298_s10, 0  ;;  %p362_p13 = scmp.gt.s32.totalorder %s361_s13, 0 }
  0x82   : > { %vm240_vm0 = vcmp.eq.s32.totalorder %v239_v49, 1  ;;  %s1468_s10 = smov (!%p299_p11, %s298_s10), 0  ;;  %p366_p0 = scmp.ge.s32.totalorder %s361_s13, 0 }
  0x83   : > { %v241_v50 = vsel %vm240_vm0, %v236_v48, 0.0  ;;  %s304_s12 = scalar_select %p303_p12, 1, 0 }
  0x84   : > { %251 = vrot.lane.b32.xlu0 %v241_v50, %s904_s20  ;;  %s301_s19 = scalar_lea.vmem [#allocation2], %s1468_s10  ;;  %s1470_s13 = smov (!%p362_p13, %s361_s13), 0 }
  0x85   : > { %v302_v51 = vld [vmem:[%s301_s19] sm:$0x1]  ;;  %v305_v52 = vstv %s304_s12  ;;  %s367_s21 = scalar_select %p366_p0, 1, 0 }
  0x86   : > { %vm306_vm1 = vcmp.eq.s32.totalorder %v305_v52, 1  ;;  %p425_p1 = scmp.gt.s32.totalorder %s1236_s0, 0  ;;  %s364_s22 = scalar_lea.vmem [#allocation2], %s1470_s13 }
  0x87   : > { %v307_v53 = vsel %vm306_vm1, %v302_v51, 0.0  ;;  %v365_v54 = vld [vmem:[%s364_s22] sm:$0x1]  ;;  %v368_v55 = vstv %s367_s21  ;;  %p429_p2 = scmp.ge.s32.totalorder %s1236_s0, 0  ;;  %s549_s28 = sadd.s32 3, %s1147_s11 }
  0x88   : > { %317 = vrot.lane.b32.xlu1 %v307_v53, %s904_s20  ;;  %vm369_vm2 = vcmp.eq.s32.totalorder %v368_v55, 1  ;;  %s1472_s0 = smov (!%p425_p1, %s1236_s0), 0  ;;  %s550_s3 = sld [smem:[#allocation5 + %s549_s28]] }
  0x89   : > { %v370_v56 = vsel %vm369_vm2, %v365_v54, 0.0  ;;  %s430_s24 = scalar_select %p429_p2, 1, 0 }
  0x8a   : > { %380 = vrot.lane.b32.xlu0 %v370_v56, %s904_s20  ;;  %s427_s30 = scalar_lea.vmem [#allocation2], %s1472_s0  ;;  %s612_s4 = sadd.s32 3, %s1175_s6 }
  0x8b   : > { %v428_v57 = vld [vmem:[%s427_s30] sm:$0x1]  ;;  %v431_v58 = vstv %s430_s24  ;;  %s613_s8 = sld [smem:[#allocation5 + %s612_s4]]  ;;  %s675_s9 = sadd.s32 3, %s1170_s29 }
  0x8c   : > { %vm432_vm3 = vcmp.eq.s32.totalorder %v431_v58, 1  ;;  %p488_p3 = scmp.gt.s32.totalorder %s487_s23, 0  ;;  %p492_p4 = scmp.ge.s32.totalorder %s487_s23, 0 }
  0x8d   : > { %v433_v59 = vsel %vm432_vm3, %v428_v57, 0.0  ;;  %s1249_s10 = sld [smem:[#allocation5 + %s675_s9]] }
  0x8e   : > { %443 = vrot.lane.b32.xlu1 %v433_v59, %s904_s20  ;;  %s1474_s23 = smov (!%p488_p3, %s487_s23), 0  ;;  %p551_p5 = scmp.gt.s32.totalorder %s550_s3, 0 }
  0x8f   : > { %s493_s16 = scalar_select %p492_p4, 1, 0 }
  0x90   : > { %s490_s13 = scalar_lea.vmem [#allocation2], %s1474_s23  ;;  %p555_p6 = scmp.ge.s32.totalorder %s550_s3, 0 }
  0x91   : > { %v491_v60 = vld [vmem:[%s490_s13] sm:$0x1]  ;;  %v494_v61 = vstv %s493_s16  ;;  %p614_p7 = scmp.gt.s32.totalorder %s613_s8, 0  ;;  %s1476_s3 = smov (!%p551_p5, %s550_s3), 0 }
  0x92   : > { %vm495_vm4 = vcmp.eq.s32.totalorder %v494_v61, 1  ;;  %s556_s15 = scalar_select %p555_p6, 1, 0 }
  0x93   : > { %v496_v62 = vsel %vm495_vm4, %v491_v60, 0.0  ;;  %p618_p8 = scmp.ge.s32.totalorder %s613_s8, 0  ;;  %s553_s0 = scalar_lea.vmem [#allocation2], %s1476_s3 }
  0x94   : > { %506 = vrot.lane.b32.xlu0 %v496_v62, %s904_s20  ;;  %v554_v63 = vld [vmem:[%s553_s0] sm:$0x1]  ;;  %v557_v0 = vstv %s556_s15  ;;  %s1478_s8 = smov (!%p614_p7, %s613_s8), 0  ;;  %p677_p9 = scmp.gt.s32.totalorder %s1249_s10, 0 }
  0x95   : > { %vm558_vm5 = vcmp.eq.s32.totalorder %v557_v0, 1  ;;  %s619_s14 = scalar_select %p618_p8, 1, 0 }
  0x96   : > { %v559_v1 = vsel %vm558_vm5, %v554_v63, 0.0  ;;  %s616_s17 = scalar_lea.vmem [#allocation2], %s1478_s8  ;;  %p681_p10 = scmp.ge.s32.totalorder %s1249_s10, 0 }
  0x97   : > { %569 = vrot.lane.b32.xlu1 %v559_v1, %s904_s20  ;;  %v617_v2 = vld [vmem:[%s616_s17] sm:$0x1]  ;;  %v620_v3 = vstv %s619_s14  ;;  %s1480_s10 = smov (!%p677_p9, %s1249_s10), 0  ;;  %s199_s19 = sld [smem:[#allocation5 + %s1124_s26]] }
  0x98   : > { %vm621_vm6 = vcmp.eq.s32.totalorder %v620_v3, 1  ;;  %s682_s18 = scalar_select %p681_p10, 1, 0 }
  0x99   : > { %v622_v4 = vsel %vm621_vm6, %v617_v2, 0.0  ;;  %s679_s12 = scalar_lea.vmem [#allocation2], %s1480_s10  ;;  %s328_s21 = sld [smem:[#allocation5 + %s1128_s27]] }
  0x9a   : > { %632 = vrot.lane.b32.xlu0 %v622_v4, %s904_s20  ;;  %v680_v5 = vld [vmem:[%s679_s12] sm:$0x1]  ;;  %v683_v6 = vstv %s682_s18  ;;  %s391_s23 = sld [smem:[#allocation5 + %s1135_s5]] }
  0x9b   : > { %vm684_vm7 = vcmp.eq.s32.totalorder %v683_v6, 1  ;;  %s1283_s26 = sld [smem:[#allocation5 + %s1147_s11]] }
  0x9c   : > { %v685_v7 = vsel %vm684_vm7, %v680_v5, 0.0  ;;  %s1310_s3 = sld [smem:[#allocation5 + %s1175_s6]] }
  0x9d   : > { %695 = vrot.lane.b32.xlu1 %v685_v7, %s904_s20  ;;  %s265_s20 = sld [smem:[#allocation5 + %s1139_s7]]  ;;  %p200_p11 = scmp.gt.s32.totalorder %s199_s19, 0 }
  0x9e   : > { %p204_p12 = scmp.ge.s32.totalorder %s199_s19, 0  ;;  %s1286_s7 = sld [smem:[#allocation5 + %s1166_s1]] }
  0x9f   : > { %s1482_s19 = smov (!%p200_p11, %s199_s19), 0  ;;  %p329_p1 = scmp.gt.s32.totalorder %s328_s21, 0 }
  0xa0   : > { %s205_s22 = scalar_select %p204_p12, 1, 0 }
  0xa1   : > { %p333_p2 = scmp.ge.s32.totalorder %s328_s21, 0  ;;  %s1486_s21 = smov (!%p329_p1, %s328_s21), 0 }
  0xa2   : > { %v206_v21 = vstv %s205_s22  ;;  %p392_p3 = scmp.gt.s32.totalorder %s391_s23, 0  ;;  %p396_p4 = scmp.ge.s32.totalorder %s391_s23, 0 }
  0xa3   : > { %p266_p13 = scmp.gt.s32.totalorder %s265_s20, 0  ;;  %p270_p0 = scmp.ge.s32.totalorder %s265_s20, 0  ;;  %vm1292_vm8 = vcmp.eq.s32.totalorder %v206_v21, 1 }
  0xa4   : > { %s202_s5 = scalar_lea.vmem [#allocation2], %s1482_s19  ;;  %s793_s1 = sshll.u32 %s899_s25, 3 }
  0xa5   : > { %s1484_s20 = smov (!%p266_p13, %s265_s20), 0  ;;  %v203_v23 = vld [vmem:[%s202_s5] sm:$0x1]  ;;  %p518_p5 = scmp.gt.s32.totalorder %s1283_s26, 0 }
  0xa6   : > { %s271_s27 = scalar_select %p270_p0, 1, 0  ;;  %v208_v27 = vsel %vm1292_vm8, %v203_v23, 0.0 }
  0xa7   : > { %s334_s11 = scalar_select %p333_p2, 1, 0 }
  0xa8   : > { %v272_v25 = vstv %s271_s27  ;;  %s1301_s24 = scalar_select %p392_p3, %s391_s23, 0 }
  0xa9   : > { %v335_v28 = vstv %s334_s11  ;;  %s397_s28 = scalar_select %p396_p4, 1, 0  ;;  %vm1304_vm11 = vcmp.eq.s32.totalorder %v272_v25, 1 }
  0xaa   : > { %s268_s30 = scalar_lea.vmem [#allocation2], %s1484_s20  ;;  %p455_p6 = scmp.gt.s32.totalorder %s1286_s7, 0  ;;  %vm1316_vm13 = vcmp.eq.s32.totalorder %v335_v28, 1 }
  0xab   : > { %v269_v29 = vld [vmem:[%s268_s30] sm:$0x1]  ;;  %s331_s4 = scalar_lea.vmem [#allocation2], %s1486_s21  ;;  %p459_p7 = scmp.ge.s32.totalorder %s1286_s7, 0  ;;  %v398_v38 = vstv %s397_s28 }
  0xac   : > { %v332_v33 = vld [vmem:[%s331_s4] sm:$0x1]  ;;  %v274_v36 = vsel %vm1304_vm11, %v269_v29, 0.0  ;;  %s1325_s6 = sld [smem:[#allocation5 + %s1170_s29]]  ;;  %p522_p8 = scmp.ge.s32.totalorder %s1283_s26, 0  ;;  %vm1345_vm14 = vcmp.eq.s32.totalorder %v398_v38, 1 }
  0xad   : > { %s1332_s8 = scalar_select %p518_p5, %s1283_s26, 0  ;;  %v337_v40 = vsel %vm1316_vm13, %v332_v33, 0.0 }
  0xae   : > { %s1334_s9 = scalar_lea.vmem [#allocation6], %s793_s1  ;;  %s394_s10 = scalar_lea.vmem [#allocation2], %s1301_s24 }
  0xaf   : > { %s456_s29 = scalar_select %p455_p6, %s1286_s7, 0  ;;  %v395_v42 = vld [vmem:[%s394_s10] sm:$0x1] }
  0xb0   : > { %s460_s16 = scalar_select %p459_p7, 1, 0  ;;  %v400_v48 = vsel %vm1345_vm14, %v395_v42, 0.0 }
  0xb1   : > { %s1355_s13 = scalar_select %p522_p8, 1, 0 }
  0xb2   : > { %p581_p9 = scmp.gt.s32.totalorder %s1310_s3, 0  ;;  %p585_p10 = scmp.ge.s32.totalorder %s1310_s3, 0  ;;  %v461_v51 = vstv %s460_s16 }
  0xb3   : > { %p644_p11 = scmp.gt.s32.totalorder %s1325_s6, 0  ;;  %p648_p12 = scmp.ge.s32.totalorder %s1325_s6, 0  ;;  %vm462_vm15 = vcmp.eq.s32.totalorder %v461_v51, 1  ;;  %v524_v57 = vstv %s1355_s13 }
  0xb4   : > { %s1488_s3 = smov (!%p581_p9, %s1310_s3), 0  ;;  %s457_s15 = scalar_lea.vmem [#allocation2], %s456_s29  ;;  %vm525_vm0 = vcmp.eq.s32.totalorder %v524_v57, 1 }
  0xb5   : > { %v244_v8 = vpop.permute.xlu0 %243  ;;  %v458_v54 = vld [vmem:[%s457_s15] sm:$0x1]  ;;  %s586_s0 = scalar_select %p585_p10, 1, 0 }
  0xb6   : > { %v255_v32 = vsel %vm254_vm9, %v208_v27, %v244_v8  ;;  %s645_s14 = scalar_select %p644_p11, %s1325_s6, 0  ;;  %v463_v59 = vsel %vm462_vm15, %v458_v54, 0.0 }
  0xb7   : > { %v1258_v9 = vpop.permute.xlu1 %372  ;;  %s649_s17 = scalar_select %p648_p12, 1, 0  ;;  %v587_v61 = vstv %s586_s0 }
  0xb8   : > { %v383_v47 = vsel %vm254_vm9, %v337_v40, %v1258_v9  ;;  %s520_s18 = scalar_lea.vmem [#allocation2], %s1332_s8  ;;  %s583_s12 = scalar_lea.vmem [#allocation2], %s1488_s3  ;;  %vm588_vm1 = vcmp.eq.s32.totalorder %v587_v61, 1 }
  0xb9   : > { %v521_v60 = vld [vmem:[%s520_s18] sm:$0x1]  ;;  %v650_v3 = vstv %s649_s17  ;;  %s646_s19 = scalar_lea.vmem [#allocation2], %s645_s14  ;;  %s195_s25 = sadd.s32 1, %s899_s25  }
  0xba   : > { %v248_v10 = vpop.permute.xlu0 %247  ;;  %v526_v63 = vsel %vm525_vm0, %v521_v60, 0.0  ;;  %v584_v0 = vld [vmem:[%s583_s12] sm:$0x1]  ;;  %vm651_vm2 = vcmp.eq.s32.totalorder %v650_v3, 1  ;;  %p192_p13 = scmp.ge.s32.totalorder %s195_s25, 4  }
  0xbb   : > { %v257_v35 = vsel %vm256_vm10, %v255_v32, %v248_v10  ;;  %v589_v6 = vsel %vm588_vm1, %v584_v0, 0.0  ;;  %v647_v7 = vld [vmem:[%s646_s19] sm:$0x1]  ;;  %s905_s20 = smov (%p192_p13), [#allocation6]  }
  0xbc   :  { %s708_s21 = sshll.u32 (%p192_p13), %s905_s20, 4  ;;  %s709_s21 = int_to_ptr.vmem [resolvable:$true] %s708_s21 }
  0xbd   : > { %v1260_v11 = vpop.permute.xlu1 %435  ;;  %s865_s22 = scalar_lea.vmem (%p192_p13), %s709_s21, 512  ;;  %p870_p1 = scmp.lt.s32.totalorder (%p192_p13), %s709_s21, %s709_s21 }
  0xbe   : > { %v446_v53 = vsel %vm254_vm9, %v400_v48, %v1260_v11  ;;  %p866_p0 = scmp.ne.s32.totalorder (%p192_p13), %s709_s21, %s865_s22  ;;  %p871_p2 = scmp.lt.s32.totalorder (%p192_p13), %s865_s22, %s865_s22 }
  0xc0   : > { %v1262_v12 = vpop.permute.xlu0 %309  ;;  %p872_p3 = por (%p192_p13), %p871_p2, %p870_p1 }
  0xc1   : > { %v320_v41 = vsel %vm254_vm9, %v274_v36, %v1262_v12  ;;  %v652_v12 = vsel %vm651_vm2, %v647_v7, 0.0 }
  0xc2   :  { %p873_p4 = pnand (%p192_p13), %p872_p3, %p866_p0 }
  0xcb   : > { %v1264_v13 = vpop.permute.xlu1 %561 }
  0xcc   : > { %v572_v5 = vsel %vm254_vm9, %v526_v63, %v1264_v13 }
  0xce   : > { %v1267_v14 = vpop.permute.xlu0 %498 }
  0xcf   : > { %v509_v62 = vsel %vm254_vm9, %v463_v59, %v1267_v14 }
  0xd1   : > { %v1269_v15 = vpop.permute.xlu1 %687 }
  0xd4   : > { %v1271_v16 = vpop.permute.xlu0 %624 }
  0xd5   : > { %v635_v11 = vsel %vm254_vm9, %v589_v6, %v1271_v16 }
  0xd7   : > { %v1275_v17 = vpop.permute.xlu1 %313 }
  0xd8   : > { %v321_v44 = vsel %vm256_vm10, %v320_v41, %v1275_v17 }
  0xe0   : > { %v1277_v18 = vpop.permute.xlu0 %376 }
  0xe1   : > { %v384_v49 = vsel %vm256_vm10, %v383_v47, %v1277_v18  ;;  %v698_v18 = vsel %vm254_vm9, %v652_v12, %v1269_v15 }
  0xe3   : > { %v1280_v19 = vpop.permute.xlu1 %439 }
  0xe4   : > { %v447_v55 = vsel %vm256_vm10, %v446_v53, %v1280_v19 }
  0xe5   : > { %v1288_v20 = vpop.permute.xlu0 %502 }
  0xe6   : > { %v510_v1 = vsel %vm256_vm10, %v509_v62, %v1288_v20 }
  0xe9   : > { %v1290_v22 = vpop.permute.xlu1 %565 }
  0xea   : > { %v573_v8 = vsel %vm256_vm10, %v572_v5, %v1290_v22 }
  0xeb   : > { %v1296_v26 = vpop.permute.xlu0 %628 }
  0xec   : > { %v636_v14 = vsel %vm256_vm10, %v635_v11, %v1296_v26 }
  0xef   : > { %v1312_v31 = vpop.permute.xlu1 %691 }
  0xf0   : > { %v699_v19 = vsel %vm256_vm10, %v698_v18, %v1312_v31 }
  0xf6   : > { %v252_v37 = vpop.permute.xlu0 %251 }
  0xf7   : > { %v259_v39 = vsel %vm258_vm12, %v257_v35, %v252_v37 }
  0xf8   : > { %261 = vst [vmem:[%s1334_s9] sm:$0x1] %v259_v39 }
  0xfa   : > { %v318_v45 = vpop.permute.xlu1 %317 }
  0xfb   : > { %v322_v46 = vsel %vm258_vm12, %v321_v44, %v318_v45 }
  0xfc   : > { %797 = vst [vmem:[%s1334_s9 + $0x1] sm:$0x1] %v322_v46  ;;  %v381_v50 = vpop.permute.xlu0 %380 }
  0xfd   : > { %v385_v52 = vsel %vm258_vm12, %v384_v49, %v381_v50 }
  0xfe   : > { %800 = vst [vmem:[%s1334_s9 + $0x2] sm:$0x1] %v385_v52 }
 0x100   : > { %v444_v56 = vpop.permute.xlu1 %443 }
 0x101   : > { %v448_v58 = vsel %vm258_vm12, %v447_v55, %v444_v56 }
 0x102   : > { %803 = vst [vmem:[%s1334_s9 + $0x3] sm:$0x1] %v448_v58 }
 0x106   : > { %v507_v2 = vpop.permute.xlu0 %506 }
 0x107   : > { %v511_v4 = vsel %vm258_vm12, %v510_v1, %v507_v2 }
 0x108   : > { %806 = vst [vmem:[%s1334_s9 + $0x4] sm:$0x1] %v511_v4 }
 0x109   : > { %v570_v9 = vpop.permute.xlu1 %569 }
 0x10a   : > { %v574_v10 = vsel %vm258_vm12, %v573_v8, %v570_v9 }
 0x10b   : > { %809 = vst [vmem:[%s1334_s9 + $0x5] sm:$0x1] %v574_v10  ;;  %194 = sbr.rel (!%p192_p13) target bundleno = 51 (0x33), region = 113 }
 0x10c   : > { %v633_v13 = vpop.permute.xlu0 %632 }
 0x10d   : > { %v637_v17 = vsel %vm258_vm12, %v636_v14, %v633_v13 }
 0x10e   : > { %812 = vst [vmem:[%s1334_s9 + $0x6] sm:$0x1] %v637_v17 }
 0x10f   : > { %v696_v20 = vpop.permute.xlu1 %695 }
 0x110   : > { %v700_v21 = vsel %vm258_vm12, %v699_v19, %v696_v20 }
 0x111   : > { %815 = vst [vmem:[%s1334_s9 + $0x7] sm:$0x1] %v700_v21 }
 0x112   :  { %876 = shalt.err (!%p873_p4)
}
 0x113   :  { %s877_s7 = scalar_lea.hbm %s1424_s2, 512 }
 0x114   :  { %p878_p5 = scmp.ne.s32.totalorder %s1424_s2, %s877_s7  ;;  %p881_p6 = scmp.lt.u32.totalorder %s877_s7, %s1424_s2 }
 0x116   :  { %p883_p7 = pnand %p881_p6, %p878_p5 }
 0x118   :  { %886 = shalt.err (!%p883_p7)
}
 0x119   :  { %s906_s1 = smov 128   ;;  %s907_s24 = smov 8  }
 0x11a   :  { %714 = dma.vmem_to_hbm [thread:$0]  %s709_s21, 512, %s1424_s2, [#allocation7], %s906_s1, %s906_s1, %s907_s24  }
 0x11b   :  { %895 = dma.done.wait [#allocation7], 512  }
 0x11c   :  { %896 = vsyncadd [#allocation7], 4294966784 }
 0x11d   :  { %718 = vsyncpa [#allocation7], 1 }
 0x11e   :  { %719 = vsyncmov [#allocation3] }
 0x121   :  { %s720_s3 = vpop.sfrf %719 }
 0x122   :  { %p816_p8 = scmp.ne.s32.totalorder %s720_s3, 0 }
 0x124   :  { %724 = shalt.err (%p816_p8)  }

</bundles_post_ra>
